<compile_context>
chip_gen: v5e
topology: v5e:2x2
jax: 0.10.0
libtpu: 0.0.40
codegen_flags: <defaults>
</compile_context>

<pallas_src>
import numpy as np
import jax
import jax.numpy as jnp
from jax.experimental import pallas as pl
from jax.experimental.pallas import tpu as pltpu

BATCH = 8          # DPL hard-codes (8, .) buffers
IN_DIM = 3
DEC_HIDDEN = 6     # MLPRecon(hidden_neurons=6) in DPL_R.__init__
EPS_P = 1e-5
EPS_PRED = 1e-3
EPS_RECON = 1e-3   # MLPRecon really uses /(1 + 3*1e-3) -- kept as in the PyTorch source
SLAB_LANES = 128   # lane-dense parameter slab width
OUT_W = 128        # single lane-dense output block: [pred(2)|recon(3)|logitC(3)|C_hard(3)|pad]
XIN_W = 3 * IN_DIM # packed input block: [x(3) | gumbel_even(3) | gumbel_odd(3)]

_PARAM_ORDER = ("w1", "b1", "w2", "b2", "w3", "b3",
                "dw1", "db1", "dw2", "db2", "dw3", "db3")


def pack_params(params):
    """Pack the 12 weight/bias arrays into one (R, 128) f32 slab.

    Block starts are 8-row aligned (sublane aligned); done once at init so the
    forward pass moves a single parameter buffer instead of 12 tiny DMAs.
    Returns (slab, offsets) where offsets[name] is the static starting row.
    """
    pieces = []
    offsets = {}
    row = 0
    for name in _PARAM_ORDER:
        a = jnp.asarray(params[name], jnp.float32)
        r, c = a.shape
        offsets[name] = row
        padded = jnp.pad(a, ((0, (-r) % 8), (0, SLAB_LANES - c)))
        pieces.append(padded)
        row += padded.shape[0]
    return jnp.concatenate(pieces, axis=0), offsets


def _make_kernel(hidden, offs):
    H = hidden

    def kernel(xin_ref, slab_ref, out_ref):
        def dense(inp, wname, bname, k_dim, n_out, relu=False):
            # Tiny layers (K<=32, N<=32, M=8): unrolled VPU multiply-accumulate
            # instead of an MXU pass at <1% utilization per layer.
            rw, rb = offs[wname], offs[bname]
            w = slab_ref[rw:rw + k_dim, 0:n_out]          # (k_dim, n_out)
            acc = slab_ref[rb:rb + 1, 0:n_out]            # (1, n_out) bias, broadcasts
            for k in range(k_dim):
                acc = acc + inp[:, k:k + 1] * w[k:k + 1, :]
            return jnp.maximum(acc, 0.0) if relu else acc

        xin = xin_ref[...]                                # (8, 9)
        x = xin[:, 0:IN_DIM]                              # (8, 3)
        g_even = xin[:, IN_DIM:2 * IN_DIM]                # Gumbel noise for even C columns
        g_odd = xin[:, 2 * IN_DIM:3 * IN_DIM]             # Gumbel noise for odd  C columns

        # ---- Encoder (DPL.mlp): Linear(3,H)+ReLU -> Linear(H,H)+ReLU -> Linear(H,3)
        h = dense(x, "w1", "b1", IN_DIM, H, relu=True)
        h = dense(h, "w2", "b2", H, H, relu=True)
        logitC = dense(h, "w3", "b3", H, IN_DIM)          # (8, 3)

        # ---- pC columns: pC[:,2i] = (1-sig+eps)/(1+2eps), pC[:,2i+1] = (sig+eps)/(1+2eps)
        sig = jax.nn.sigmoid(logitC)
        p0 = (1.0 - sig + EPS_P) / (1.0 + 2.0 * EPS_P)
        p1 = (sig + EPS_P) / (1.0 + 2.0 * EPS_P)

        # ---- XOR layer: W[i,j,k] == 1 iff (i+j+k+1) % 2 == 0  (i.e. i+j+k odd)
        pa0, pa1 = p0[:, 0:1], p1[:, 0:1]
        pb0, pb1 = p0[:, 1:2], p1[:, 1:2]
        pc0, pc1 = p0[:, 2:3], p1[:, 2:3]
        pred1 = (pa1 * pb0 * pc0
                 + pa0 * pb1 * pc0
                 + pa0 * pb0 * pc1
                 + pa1 * pb1 * pc1)                       # (8, 1)
        # pred[:,0] = 1 - pred[:,1]; pred = (pred + 1e-3)/(1 + 2e-3)
        pred = jnp.concatenate([1.0 - pred1, pred1], axis=1)   # no captured array consts
        pred = (pred + EPS_PRED) / (1.0 + 2.0 * EPS_PRED)

        # ---- Hard Gumbel-Softmax (tau=1) on C[:,2i]=logit/2, C[:,2i+1]=-logit/2.
        even_score = 0.5 * logitC + g_even
        odd_score = -0.5 * logitC + g_odd
        # hard=True -> argmax; torch ties -> first (even) index, so odd wins only on strict '>'
        c_hard = jnp.where(odd_score > even_score, 1.0, 0.0)   # C_hard[:, [1, 3, 5]]

        # ---- Decoder (MLPRecon, hidden=6): Linear(3,6)+ReLU -> Linear(6,6)+ReLU -> Linear(6,3)
        d = dense(c_hard, "dw1", "db1", IN_DIM, DEC_HIDDEN, relu=True)
        d = dense(d, "dw2", "db2", DEC_HIDDEN, DEC_HIDDEN, relu=True)
        pG = jax.nn.sigmoid(dense(d, "dw3", "db3", DEC_HIDDEN, IN_DIM))
        recon = (pG + EPS_RECON) / (1.0 + 3.0 * EPS_RECON)

        # ---- Single lane-dense (8, 128) output block
        out_ref[...] = jnp.zeros_like(out_ref)
        out_ref[:, 0:2] = pred
        out_ref[:, 2:2 + IN_DIM] = recon
        out_ref[:, 2 + IN_DIM:2 + 2 * IN_DIM] = logitC
        out_ref[:, 2 + 2 * IN_DIM:2 + 3 * IN_DIM] = c_hard

    return kernel


def dpl_r_forward(x, gumbel, slab, offsets, hidden):
    """x: (G*8, 3) f32, gumbel: (G*8, 6) f32 Gumbel(0,1) noise.

    G independent DPL_R batches of 8 handled in one call.
    Returns (pred, recon, logitC, c_hard); the first three match the PyTorch
    module's return, c_hard is the extra hard Gumbel-Softmax code used by the
    decoder (exposed for testing).
    """
    total = x.shape[0]
    assert total % BATCH == 0, "row count must be a multiple of the hard-coded batch of 8"
    groups = total // BATCH
    rows = slab.shape[0]

    xin = jnp.concatenate([x.astype(jnp.float32),
                           gumbel.astype(jnp.float32)], axis=1)   # (total, 9)

    out = pl.pallas_call(
        _make_kernel(hidden, offsets),
        out_shape=jax.ShapeDtypeStruct((total, OUT_W), jnp.float32),
        grid=(groups,),
        in_specs=[
            pl.BlockSpec((BATCH, XIN_W), lambda g: (g, 0)),
            pl.BlockSpec((rows, SLAB_LANES), lambda g: (0, 0)),   # resident slab
        ],
        out_specs=pl.BlockSpec((BATCH, OUT_W), lambda g: (g, 0)),
        compiler_params=pltpu.CompilerParams(
            dimension_semantics=("parallel",)),                   # megacore-shardable (v7x)
    )(xin, slab)

    pred = out[:, 0:2]
    recon = out[:, 2:2 + IN_DIM]
    logitC = out[:, 2 + IN_DIM:2 + 2 * IN_DIM]
    c_hard = out[:, 2 + 2 * IN_DIM:2 + 3 * IN_DIM]
    return pred, recon, logitC, c_hard


def _linear_init(key, fan_in, fan_out):
    """torch.nn.Linear-style init: U[-1/sqrt(fan_in), 1/sqrt(fan_in)].

    Weight stored as (fan_in, fan_out) so the kernel computes x @ W + b;
    bias stored as (1, fan_out).
    """
    kw, kb = jax.random.split(key)
    bound = 1.0 / jnp.sqrt(jnp.float32(fan_in))
    w = jax.random.uniform(kw, (fan_in, fan_out), jnp.float32, -bound, bound)
    b = jax.random.uniform(kb, (1, fan_out), jnp.float32, -bound, bound)
    return w, b


def make_params(hidden, key):
    keys = jax.random.split(key, 6)
    w1, b1 = _linear_init(keys[0], IN_DIM, hidden)            # encoder layer1
    w2, b2 = _linear_init(keys[1], hidden, hidden)            # encoder layer2
    w3, b3 = _linear_init(keys[2], hidden, IN_DIM)            # encoder layer3
    dw1, db1 = _linear_init(keys[3], IN_DIM, DEC_HIDDEN)      # decoder layer1
    dw2, db2 = _linear_init(keys[4], DEC_HIDDEN, DEC_HIDDEN)  # decoder layer2
    dw3, db3 = _linear_init(keys[5], DEC_HIDDEN, IN_DIM)      # decoder layer3
    return dict(w1=w1, b1=b1, w2=w2, b2=b2, w3=w3, b3=b3,
                dw1=dw1, db1=db1, dw2=dw2, db2=db2, dw3=dw3, db3=db3)


if __name__ == "__main__":
    # TODO(synk): only the args.disent == False branch of DPL is implemented
    # (the shared-weight / disentangled 1x1 branches are unused by DPL_R here).
    hidden = 32
    groups = 2                       # 2 independent DPL_R batches of 8 in one call
    root = jax.random.PRNGKey(0)
    k_x, k_params, k_noise = jax.random.split(root, 3)

    x = jax.random.normal(k_x, (groups * BATCH, IN_DIM), jnp.float32)
    gumbel = jax.random.gumbel(k_noise, (groups * BATCH, 2 * IN_DIM), jnp.float32)
    params = make_params(hidden, k_params)
    slab, offsets = pack_params(params)   # built once at init

    pred, recon, logitC, c_hard = dpl_r_forward(x, gumbel, slab, offsets, hidden)
    jax.block_until_ready((pred, recon, logitC, c_hard))

    # ---- shape / sanity checks
    assert pred.shape == (groups * BATCH, 2)
    assert recon.shape == (groups * BATCH, IN_DIM)
    assert logitC.shape == (groups * BATCH, IN_DIM)
    assert bool(jnp.all(jnp.isfinite(pred)))
    assert bool(jnp.all(jnp.isfinite(recon)))
    assert bool(jnp.all(jnp.isfinite(logitC)))
    assert bool(jnp.all((recon > 0.0) & (recon < 1.0)))

    # ---- reference check: encoder + XOR layer (deterministic path)
    xn = np.asarray(x, np.float32)
    gn = np.asarray(gumbel, np.float32)
    pn = {k: np.asarray(v, np.float32) for k, v in params.items()}
    h = np.maximum(xn @ pn["w1"] + pn["b1"], 0.0)
    h = np.maximum(h @ pn["w2"] + pn["b2"], 0.0)
    logit_ref = h @ pn["w3"] + pn["b3"]
    sig = 1.0 / (1.0 + np.exp(-logit_ref))
    p0 = (1.0 - sig + EPS_P) / (1.0 + 2.0 * EPS_P)
    p1 = (sig + EPS_P) / (1.0 + 2.0 * EPS_P)
    pred1 = (p1[:, 0] * p0[:, 1] * p0[:, 2]
             + p0[:, 0] * p1[:, 1] * p0[:, 2]
             + p0[:, 0] * p0[:, 1] * p1[:, 2]
             + p1[:, 0] * p1[:, 1] * p1[:, 2])
    pred_ref = np.stack([1.0 - pred1, pred1], axis=1)
    pred_ref = (pred_ref + EPS_PRED) / (1.0 + 2.0 * EPS_PRED)

    np.testing.assert_allclose(np.asarray(logitC), logit_ref, rtol=1e-4, atol=1e-4)
    np.testing.assert_allclose(np.asarray(pred), pred_ref, rtol=1e-4, atol=1e-4)

    # ---- reference check: hard Gumbel-Softmax decisions (skip near-tie margins)
    logit_k = np.asarray(logitC, np.float32)
    even_ref = 0.5 * logit_k + gn[:, 0:IN_DIM]
    odd_ref = -0.5 * logit_k + gn[:, IN_DIM:2 * IN_DIM]
    r_ref = (odd_ref > even_ref).astype(np.float32)
    margin_ok = np.abs(odd_ref - even_ref) > 1e-3
    r_k = np.asarray(c_hard, np.float32)
    assert np.all(r_k[margin_ok] == r_ref[margin_ok])

    # ---- reference check: decoder, driven by the kernel's own hard codes
    d = np.maximum(r_k @ pn["dw1"] + pn["db1"], 0.0)
    d = np.maximum(d @ pn["dw2"] + pn["db2"], 0.0)
    pG_ref = 1.0 / (1.0 + np.exp(-(d @ pn["dw3"] + pn["db3"])))
    recon_ref = (pG_ref + EPS_RECON) / (1.0 + 3.0 * EPS_RECON)
    np.testing.assert_allclose(np.asarray(recon), recon_ref, rtol=1e-4, atol=1e-4)

    print("KERNEL_OK")
</pallas_src>

<mosaic_0001>
module attributes {stable_mosaic.version = 11 : i64} {
  func.func @kernel(%arg0: i32, %arg1: memref<8x9xf32, #tpu.memory_space<vmem>>, %arg2: memref<144x128xf32, #tpu.memory_space<vmem>>, %arg3: memref<8x128xf32, #tpu.memory_space<vmem>>) attributes {dimension_semantics = [#tpu.dimension_semantics<parallel>], iteration_bounds = array<i64: 2>, scalar_prefetch = 0 : i64, scratch_operands = 0 : i64, tpu.core_type = #tpu.core_type<tc>, window_params = [{transform_indices = @transform_0, window_bounds = array<i64: 8, 9>}, {pipeline_mode = #tpu.pipeline_mode<synchronous>, transform_indices = @transform_1, window_bounds = array<i64: 144, 128>}, {transform_indices = @transform_2, window_bounds = array<i64: 8, 128>}]} {
    %c0 = arith.constant 0 : index
    %c0_0 = arith.constant 0 : index
    %0 = vector.load %arg1[%c0, %c0_0] : memref<8x9xf32, #tpu.memory_space<vmem>>, vector<8x9xf32>
    %1 = vector.extract_strided_slice %0 {offsets = [0, 0], sizes = [8, 3], strides = [1, 1]} : vector<8x9xf32> to vector<8x3xf32>
    %2 = vector.extract_strided_slice %0 {offsets = [0, 3], sizes = [8, 3], strides = [1, 1]} : vector<8x9xf32> to vector<8x3xf32>
    %3 = vector.extract_strided_slice %0 {offsets = [0, 6], sizes = [8, 3], strides = [1, 1]} : vector<8x9xf32> to vector<8x3xf32>
    %c0_1 = arith.constant 0 : index
    %c0_2 = arith.constant 0 : index
    %4 = vector.load %arg2[%c0_1, %c0_2] : memref<144x128xf32, #tpu.memory_space<vmem>>, vector<3x32xf32>
    %c8 = arith.constant 8 : index
    %c0_3 = arith.constant 0 : index
    %5 = vector.load %arg2[%c8, %c0_3] : memref<144x128xf32, #tpu.memory_space<vmem>>, vector<1x32xf32>
    %6 = vector.extract_strided_slice %1 {offsets = [0, 0], sizes = [8, 1], strides = [1, 1]} : vector<8x3xf32> to vector<8x1xf32>
    %7 = vector.extract_strided_slice %4 {offsets = [0, 0], sizes = [1, 32], strides = [1, 1]} : vector<3x32xf32> to vector<1x32xf32>
    %8 = vector.broadcast %6 : vector<8x1xf32> to vector<8x32xf32>
    %9 = vector.broadcast %7 : vector<1x32xf32> to vector<8x32xf32>
    %10 = arith.mulf %8, %9 : vector<8x32xf32>
    %11 = vector.broadcast %5 : vector<1x32xf32> to vector<8x32xf32>
    %12 = arith.addf %11, %10 : vector<8x32xf32>
    %13 = vector.extract_strided_slice %1 {offsets = [0, 1], sizes = [8, 1], strides = [1, 1]} : vector<8x3xf32> to vector<8x1xf32>
    %14 = vector.extract_strided_slice %4 {offsets = [1, 0], sizes = [1, 32], strides = [1, 1]} : vector<3x32xf32> to vector<1x32xf32>
    %15 = vector.broadcast %13 : vector<8x1xf32> to vector<8x32xf32>
    %16 = vector.broadcast %14 : vector<1x32xf32> to vector<8x32xf32>
    %17 = arith.mulf %15, %16 : vector<8x32xf32>
    %18 = arith.addf %12, %17 : vector<8x32xf32>
    %19 = vector.extract_strided_slice %1 {offsets = [0, 2], sizes = [8, 1], strides = [1, 1]} : vector<8x3xf32> to vector<8x1xf32>
    %20 = vector.extract_strided_slice %4 {offsets = [2, 0], sizes = [1, 32], strides = [1, 1]} : vector<3x32xf32> to vector<1x32xf32>
    %21 = vector.broadcast %19 : vector<8x1xf32> to vector<8x32xf32>
    %22 = vector.broadcast %20 : vector<1x32xf32> to vector<8x32xf32>
    %23 = arith.mulf %21, %22 : vector<8x32xf32>
    %24 = arith.addf %18, %23 : vector<8x32xf32>
    %cst = arith.constant 0.000000e+00 : f32
    %25 = vector.broadcast %cst : f32 to vector<8x32xf32>
    %26 = arith.maximumf %24, %25 : vector<8x32xf32>
    %c16 = arith.constant 16 : index
    %c0_4 = arith.constant 0 : index
    %27 = vector.load %arg2[%c16, %c0_4] : memref<144x128xf32, #tpu.memory_space<vmem>>, vector<32x32xf32>
    %c48 = arith.constant 48 : index
    %c0_5 = arith.constant 0 : index
    %28 = vector.load %arg2[%c48, %c0_5] : memref<144x128xf32, #tpu.memory_space<vmem>>, vector<1x32xf32>
    %29 = vector.extract_strided_slice %26 {offsets = [0, 0], sizes = [8, 1], strides = [1, 1]} : vector<8x32xf32> to vector<8x1xf32>
    %30 = vector.extract_strided_slice %27 {offsets = [0, 0], sizes = [1, 32], strides = [1, 1]} : vector<32x32xf32> to vector<1x32xf32>
    %31 = vector.broadcast %29 : vector<8x1xf32> to vector<8x32xf32>
    %32 = vector.broadcast %30 : vector<1x32xf32> to vector<8x32xf32>
    %33 = arith.mulf %31, %32 : vector<8x32xf32>
    %34 = vector.broadcast %28 : vector<1x32xf32> to vector<8x32xf32>
    %35 = arith.addf %34, %33 : vector<8x32xf32>
    %36 = vector.extract_strided_slice %26 {offsets = [0, 1], sizes = [8, 1], strides = [1, 1]} : vector<8x32xf32> to vector<8x1xf32>
    %37 = vector.extract_strided_slice %27 {offsets = [1, 0], sizes = [1, 32], strides = [1, 1]} : vector<32x32xf32> to vector<1x32xf32>
    %38 = vector.broadcast %36 : vector<8x1xf32> to vector<8x32xf32>
    %39 = vector.broadcast %37 : vector<1x32xf32> to vector<8x32xf32>
    %40 = arith.mulf %38, %39 : vector<8x32xf32>
    %41 = arith.addf %35, %40 : vector<8x32xf32>
    %42 = vector.extract_strided_slice %26 {offsets = [0, 2], sizes = [8, 1], strides = [1, 1]} : vector<8x32xf32> to vector<8x1xf32>
    %43 = vector.extract_strided_slice %27 {offsets = [2, 0], sizes = [1, 32], strides = [1, 1]} : vector<32x32xf32> to vector<1x32xf32>
    %44 = vector.broadcast %42 : vector<8x1xf32> to vector<8x32xf32>
    %45 = vector.broadcast %43 : vector<1x32xf32> to vector<8x32xf32>
    %46 = arith.mulf %44, %45 : vector<8x32xf32>
    %47 = arith.addf %41, %46 : vector<8x32xf32>
    %48 = vector.extract_strided_slice %26 {offsets = [0, 3], sizes = [8, 1], strides = [1, 1]} : vector<8x32xf32> to vector<8x1xf32>
    %49 = vector.extract_strided_slice %27 {offsets = [3, 0], sizes = [1, 32], strides = [1, 1]} : vector<32x32xf32> to vector<1x32xf32>
    %50 = vector.broadcast %48 : vector<8x1xf32> to vector<8x32xf32>
    %51 = vector.broadcast %49 : vector<1x32xf32> to vector<8x32xf32>
    %52 = arith.mulf %50, %51 : vector<8x32xf32>
    %53 = arith.addf %47, %52 : vector<8x32xf32>
    %54 = vector.extract_strided_slice %26 {offsets = [0, 4], sizes = [8, 1], strides = [1, 1]} : vector<8x32xf32> to vector<8x1xf32>
    %55 = vector.extract_strided_slice %27 {offsets = [4, 0], sizes = [1, 32], strides = [1, 1]} : vector<32x32xf32> to vector<1x32xf32>
    %56 = vector.broadcast %54 : vector<8x1xf32> to vector<8x32xf32>
    %57 = vector.broadcast %55 : vector<1x32xf32> to vector<8x32xf32>
    %58 = arith.mulf %56, %57 : vector<8x32xf32>
    %59 = arith.addf %53, %58 : vector<8x32xf32>
    %60 = vector.extract_strided_slice %26 {offsets = [0, 5], sizes = [8, 1], strides = [1, 1]} : vector<8x32xf32> to vector<8x1xf32>
    %61 = vector.extract_strided_slice %27 {offsets = [5, 0], sizes = [1, 32], strides = [1, 1]} : vector<32x32xf32> to vector<1x32xf32>
    %62 = vector.broadcast %60 : vector<8x1xf32> to vector<8x32xf32>
    %63 = vector.broadcast %61 : vector<1x32xf32> to vector<8x32xf32>
    %64 = arith.mulf %62, %63 : vector<8x32xf32>
    %65 = arith.addf %59, %64 : vector<8x32xf32>
    %66 = vector.extract_strided_slice %26 {offsets = [0, 6], sizes = [8, 1], strides = [1, 1]} : vector<8x32xf32> to vector<8x1xf32>
    %67 = vector.extract_strided_slice %27 {offsets = [6, 0], sizes = [1, 32], strides = [1, 1]} : vector<32x32xf32> to vector<1x32xf32>
    %68 = vector.broadcast %66 : vector<8x1xf32> to vector<8x32xf32>
    %69 = vector.broadcast %67 : vector<1x32xf32> to vector<8x32xf32>
    %70 = arith.mulf %68, %69 : vector<8x32xf32>
    %71 = arith.addf %65, %70 : vector<8x32xf32>
    %72 = vector.extract_strided_slice %26 {offsets = [0, 7], sizes = [8, 1], strides = [1, 1]} : vector<8x32xf32> to vector<8x1xf32>
    %73 = vector.extract_strided_slice %27 {offsets = [7, 0], sizes = [1, 32], strides = [1, 1]} : vector<32x32xf32> to vector<1x32xf32>
    %74 = vector.broadcast %72 : vector<8x1xf32> to vector<8x32xf32>
    %75 = vector.broadcast %73 : vector<1x32xf32> to vector<8x32xf32>
    %76 = arith.mulf %74, %75 : vector<8x32xf32>
    %77 = arith.addf %71, %76 : vector<8x32xf32>
    %78 = vector.extract_strided_slice %26 {offsets = [0, 8], sizes = [8, 1], strides = [1, 1]} : vector<8x32xf32> to vector<8x1xf32>
    %79 = vector.extract_strided_slice %27 {offsets = [8, 0], sizes = [1, 32], strides = [1, 1]} : vector<32x32xf32> to vector<1x32xf32>
    %80 = vector.broadcast %78 : vector<8x1xf32> to vector<8x32xf32>
    %81 = vector.broadcast %79 : vector<1x32xf32> to vector<8x32xf32>
    %82 = arith.mulf %80, %81 : vector<8x32xf32>
    %83 = arith.addf %77, %82 : vector<8x32xf32>
    %84 = vector.extract_strided_slice %26 {offsets = [0, 9], sizes = [8, 1], strides = [1, 1]} : vector<8x32xf32> to vector<8x1xf32>
    %85 = vector.extract_strided_slice %27 {offsets = [9, 0], sizes = [1, 32], strides = [1, 1]} : vector<32x32xf32> to vector<1x32xf32>
    %86 = vector.broadcast %84 : vector<8x1xf32> to vector<8x32xf32>
    %87 = vector.broadcast %85 : vector<1x32xf32> to vector<8x32xf32>
    %88 = arith.mulf %86, %87 : vector<8x32xf32>
    %89 = arith.addf %83, %88 : vector<8x32xf32>
    %90 = vector.extract_strided_slice %26 {offsets = [0, 10], sizes = [8, 1], strides = [1, 1]} : vector<8x32xf32> to vector<8x1xf32>
    %91 = vector.extract_strided_slice %27 {offsets = [10, 0], sizes = [1, 32], strides = [1, 1]} : vector<32x32xf32> to vector<1x32xf32>
    %92 = vector.broadcast %90 : vector<8x1xf32> to vector<8x32xf32>
    %93 = vector.broadcast %91 : vector<1x32xf32> to vector<8x32xf32>
    %94 = arith.mulf %92, %93 : vector<8x32xf32>
    %95 = arith.addf %89, %94 : vector<8x32xf32>
    %96 = vector.extract_strided_slice %26 {offsets = [0, 11], sizes = [8, 1], strides = [1, 1]} : vector<8x32xf32> to vector<8x1xf32>
    %97 = vector.extract_strided_slice %27 {offsets = [11, 0], sizes = [1, 32], strides = [1, 1]} : vector<32x32xf32> to vector<1x32xf32>
    %98 = vector.broadcast %96 : vector<8x1xf32> to vector<8x32xf32>
    %99 = vector.broadcast %97 : vector<1x32xf32> to vector<8x32xf32>
    %100 = arith.mulf %98, %99 : vector<8x32xf32>
    %101 = arith.addf %95, %100 : vector<8x32xf32>
    %102 = vector.extract_strided_slice %26 {offsets = [0, 12], sizes = [8, 1], strides = [1, 1]} : vector<8x32xf32> to vector<8x1xf32>
    %103 = vector.extract_strided_slice %27 {offsets = [12, 0], sizes = [1, 32], strides = [1, 1]} : vector<32x32xf32> to vector<1x32xf32>
    %104 = vector.broadcast %102 : vector<8x1xf32> to vector<8x32xf32>
    %105 = vector.broadcast %103 : vector<1x32xf32> to vector<8x32xf32>
    %106 = arith.mulf %104, %105 : vector<8x32xf32>
    %107 = arith.addf %101, %106 : vector<8x32xf32>
    %108 = vector.extract_strided_slice %26 {offsets = [0, 13], sizes = [8, 1], strides = [1, 1]} : vector<8x32xf32> to vector<8x1xf32>
    %109 = vector.extract_strided_slice %27 {offsets = [13, 0], sizes = [1, 32], strides = [1, 1]} : vector<32x32xf32> to vector<1x32xf32>
    %110 = vector.broadcast %108 : vector<8x1xf32> to vector<8x32xf32>
    %111 = vector.broadcast %109 : vector<1x32xf32> to vector<8x32xf32>
    %112 = arith.mulf %110, %111 : vector<8x32xf32>
    %113 = arith.addf %107, %112 : vector<8x32xf32>
    %114 = vector.extract_strided_slice %26 {offsets = [0, 14], sizes = [8, 1], strides = [1, 1]} : vector<8x32xf32> to vector<8x1xf32>
    %115 = vector.extract_strided_slice %27 {offsets = [14, 0], sizes = [1, 32], strides = [1, 1]} : vector<32x32xf32> to vector<1x32xf32>
    %116 = vector.broadcast %114 : vector<8x1xf32> to vector<8x32xf32>
    %117 = vector.broadcast %115 : vector<1x32xf32> to vector<8x32xf32>
    %118 = arith.mulf %116, %117 : vector<8x32xf32>
    %119 = arith.addf %113, %118 : vector<8x32xf32>
    %120 = vector.extract_strided_slice %26 {offsets = [0, 15], sizes = [8, 1], strides = [1, 1]} : vector<8x32xf32> to vector<8x1xf32>
    %121 = vector.extract_strided_slice %27 {offsets = [15, 0], sizes = [1, 32], strides = [1, 1]} : vector<32x32xf32> to vector<1x32xf32>
    %122 = vector.broadcast %120 : vector<8x1xf32> to vector<8x32xf32>
    %123 = vector.broadcast %121 : vector<1x32xf32> to vector<8x32xf32>
    %124 = arith.mulf %122, %123 : vector<8x32xf32>
    %125 = arith.addf %119, %124 : vector<8x32xf32>
    %126 = vector.extract_strided_slice %26 {offsets = [0, 16], sizes = [8, 1], strides = [1, 1]} : vector<8x32xf32> to vector<8x1xf32>
    %127 = vector.extract_strided_slice %27 {offsets = [16, 0], sizes = [1, 32], strides = [1, 1]} : vector<32x32xf32> to vector<1x32xf32>
    %128 = vector.broadcast %126 : vector<8x1xf32> to vector<8x32xf32>
    %129 = vector.broadcast %127 : vector<1x32xf32> to vector<8x32xf32>
    %130 = arith.mulf %128, %129 : vector<8x32xf32>
    %131 = arith.addf %125, %130 : vector<8x32xf32>
    %132 = vector.extract_strided_slice %26 {offsets = [0, 17], sizes = [8, 1], strides = [1, 1]} : vector<8x32xf32> to vector<8x1xf32>
    %133 = vector.extract_strided_slice %27 {offsets = [17, 0], sizes = [1, 32], strides = [1, 1]} : vector<32x32xf32> to vector<1x32xf32>
    %134 = vector.broadcast %132 : vector<8x1xf32> to vector<8x32xf32>
    %135 = vector.broadcast %133 : vector<1x32xf32> to vector<8x32xf32>
    %136 = arith.mulf %134, %135 : vector<8x32xf32>
    %137 = arith.addf %131, %136 : vector<8x32xf32>
    %138 = vector.extract_strided_slice %26 {offsets = [0, 18], sizes = [8, 1], strides = [1, 1]} : vector<8x32xf32> to vector<8x1xf32>
    %139 = vector.extract_strided_slice %27 {offsets = [18, 0], sizes = [1, 32], strides = [1, 1]} : vector<32x32xf32> to vector<1x32xf32>
    %140 = vector.broadcast %138 : vector<8x1xf32> to vector<8x32xf32>
    %141 = vector.broadcast %139 : vector<1x32xf32> to vector<8x32xf32>
    %142 = arith.mulf %140, %141 : vector<8x32xf32>
    %143 = arith.addf %137, %142 : vector<8x32xf32>
    %144 = vector.extract_strided_slice %26 {offsets = [0, 19], sizes = [8, 1], strides = [1, 1]} : vector<8x32xf32> to vector<8x1xf32>
    %145 = vector.extract_strided_slice %27 {offsets = [19, 0], sizes = [1, 32], strides = [1, 1]} : vector<32x32xf32> to vector<1x32xf32>
    %146 = vector.broadcast %144 : vector<8x1xf32> to vector<8x32xf32>
    %147 = vector.broadcast %145 : vector<1x32xf32> to vector<8x32xf32>
    %148 = arith.mulf %146, %147 : vector<8x32xf32>
    %149 = arith.addf %143, %148 : vector<8x32xf32>
    %150 = vector.extract_strided_slice %26 {offsets = [0, 20], sizes = [8, 1], strides = [1, 1]} : vector<8x32xf32> to vector<8x1xf32>
    %151 = vector.extract_strided_slice %27 {offsets = [20, 0], sizes = [1, 32], strides = [1, 1]} : vector<32x32xf32> to vector<1x32xf32>
    %152 = vector.broadcast %150 : vector<8x1xf32> to vector<8x32xf32>
    %153 = vector.broadcast %151 : vector<1x32xf32> to vector<8x32xf32>
    %154 = arith.mulf %152, %153 : vector<8x32xf32>
    %155 = arith.addf %149, %154 : vector<8x32xf32>
    %156 = vector.extract_strided_slice %26 {offsets = [0, 21], sizes = [8, 1], strides = [1, 1]} : vector<8x32xf32> to vector<8x1xf32>
    %157 = vector.extract_strided_slice %27 {offsets = [21, 0], sizes = [1, 32], strides = [1, 1]} : vector<32x32xf32> to vector<1x32xf32>
    %158 = vector.broadcast %156 : vector<8x1xf32> to vector<8x32xf32>
    %159 = vector.broadcast %157 : vector<1x32xf32> to vector<8x32xf32>
    %160 = arith.mulf %158, %159 : vector<8x32xf32>
    %161 = arith.addf %155, %160 : vector<8x32xf32>
    %162 = vector.extract_strided_slice %26 {offsets = [0, 22], sizes = [8, 1], strides = [1, 1]} : vector<8x32xf32> to vector<8x1xf32>
    %163 = vector.extract_strided_slice %27 {offsets = [22, 0], sizes = [1, 32], strides = [1, 1]} : vector<32x32xf32> to vector<1x32xf32>
    %164 = vector.broadcast %162 : vector<8x1xf32> to vector<8x32xf32>
    %165 = vector.broadcast %163 : vector<1x32xf32> to vector<8x32xf32>
    %166 = arith.mulf %164, %165 : vector<8x32xf32>
    %167 = arith.addf %161, %166 : vector<8x32xf32>
    %168 = vector.extract_strided_slice %26 {offsets = [0, 23], sizes = [8, 1], strides = [1, 1]} : vector<8x32xf32> to vector<8x1xf32>
    %169 = vector.extract_strided_slice %27 {offsets = [23, 0], sizes = [1, 32], strides = [1, 1]} : vector<32x32xf32> to vector<1x32xf32>
    %170 = vector.broadcast %168 : vector<8x1xf32> to vector<8x32xf32>
    %171 = vector.broadcast %169 : vector<1x32xf32> to vector<8x32xf32>
    %172 = arith.mulf %170, %171 : vector<8x32xf32>
    %173 = arith.addf %167, %172 : vector<8x32xf32>
    %174 = vector.extract_strided_slice %26 {offsets = [0, 24], sizes = [8, 1], strides = [1, 1]} : vector<8x32xf32> to vector<8x1xf32>
    %175 = vector.extract_strided_slice %27 {offsets = [24, 0], sizes = [1, 32], strides = [1, 1]} : vector<32x32xf32> to vector<1x32xf32>
    %176 = vector.broadcast %174 : vector<8x1xf32> to vector<8x32xf32>
    %177 = vector.broadcast %175 : vector<1x32xf32> to vector<8x32xf32>
    %178 = arith.mulf %176, %177 : vector<8x32xf32>
    %179 = arith.addf %173, %178 : vector<8x32xf32>
    %180 = vector.extract_strided_slice %26 {offsets = [0, 25], sizes = [8, 1], strides = [1, 1]} : vector<8x32xf32> to vector<8x1xf32>
    %181 = vector.extract_strided_slice %27 {offsets = [25, 0], sizes = [1, 32], strides = [1, 1]} : vector<32x32xf32> to vector<1x32xf32>
    %182 = vector.broadcast %180 : vector<8x1xf32> to vector<8x32xf32>
    %183 = vector.broadcast %181 : vector<1x32xf32> to vector<8x32xf32>
    %184 = arith.mulf %182, %183 : vector<8x32xf32>
    %185 = arith.addf %179, %184 : vector<8x32xf32>
    %186 = vector.extract_strided_slice %26 {offsets = [0, 26], sizes = [8, 1], strides = [1, 1]} : vector<8x32xf32> to vector<8x1xf32>
    %187 = vector.extract_strided_slice %27 {offsets = [26, 0], sizes = [1, 32], strides = [1, 1]} : vector<32x32xf32> to vector<1x32xf32>
    %188 = vector.broadcast %186 : vector<8x1xf32> to vector<8x32xf32>
    %189 = vector.broadcast %187 : vector<1x32xf32> to vector<8x32xf32>
    %190 = arith.mulf %188, %189 : vector<8x32xf32>
    %191 = arith.addf %185, %190 : vector<8x32xf32>
    %192 = vector.extract_strided_slice %26 {offsets = [0, 27], sizes = [8, 1], strides = [1, 1]} : vector<8x32xf32> to vector<8x1xf32>
    %193 = vector.extract_strided_slice %27 {offsets = [27, 0], sizes = [1, 32], strides = [1, 1]} : vector<32x32xf32> to vector<1x32xf32>
    %194 = vector.broadcast %192 : vector<8x1xf32> to vector<8x32xf32>
    %195 = vector.broadcast %193 : vector<1x32xf32> to vector<8x32xf32>
    %196 = arith.mulf %194, %195 : vector<8x32xf32>
    %197 = arith.addf %191, %196 : vector<8x32xf32>
    %198 = vector.extract_strided_slice %26 {offsets = [0, 28], sizes = [8, 1], strides = [1, 1]} : vector<8x32xf32> to vector<8x1xf32>
    %199 = vector.extract_strided_slice %27 {offsets = [28, 0], sizes = [1, 32], strides = [1, 1]} : vector<32x32xf32> to vector<1x32xf32>
    %200 = vector.broadcast %198 : vector<8x1xf32> to vector<8x32xf32>
    %201 = vector.broadcast %199 : vector<1x32xf32> to vector<8x32xf32>
    %202 = arith.mulf %200, %201 : vector<8x32xf32>
    %203 = arith.addf %197, %202 : vector<8x32xf32>
    %204 = vector.extract_strided_slice %26 {offsets = [0, 29], sizes = [8, 1], strides = [1, 1]} : vector<8x32xf32> to vector<8x1xf32>
    %205 = vector.extract_strided_slice %27 {offsets = [29, 0], sizes = [1, 32], strides = [1, 1]} : vector<32x32xf32> to vector<1x32xf32>
    %206 = vector.broadcast %204 : vector<8x1xf32> to vector<8x32xf32>
    %207 = vector.broadcast %205 : vector<1x32xf32> to vector<8x32xf32>
    %208 = arith.mulf %206, %207 : vector<8x32xf32>
    %209 = arith.addf %203, %208 : vector<8x32xf32>
    %210 = vector.extract_strided_slice %26 {offsets = [0, 30], sizes = [8, 1], strides = [1, 1]} : vector<8x32xf32> to vector<8x1xf32>
    %211 = vector.extract_strided_slice %27 {offsets = [30, 0], sizes = [1, 32], strides = [1, 1]} : vector<32x32xf32> to vector<1x32xf32>
    %212 = vector.broadcast %210 : vector<8x1xf32> to vector<8x32xf32>
    %213 = vector.broadcast %211 : vector<1x32xf32> to vector<8x32xf32>
    %214 = arith.mulf %212, %213 : vector<8x32xf32>
    %215 = arith.addf %209, %214 : vector<8x32xf32>
    %216 = vector.extract_strided_slice %26 {offsets = [0, 31], sizes = [8, 1], strides = [1, 1]} : vector<8x32xf32> to vector<8x1xf32>
    %217 = vector.extract_strided_slice %27 {offsets = [31, 0], sizes = [1, 32], strides = [1, 1]} : vector<32x32xf32> to vector<1x32xf32>
    %218 = vector.broadcast %216 : vector<8x1xf32> to vector<8x32xf32>
    %219 = vector.broadcast %217 : vector<1x32xf32> to vector<8x32xf32>
    %220 = arith.mulf %218, %219 : vector<8x32xf32>
    %221 = arith.addf %215, %220 : vector<8x32xf32>
    %cst_6 = arith.constant 0.000000e+00 : f32
    %222 = vector.broadcast %cst_6 : f32 to vector<8x32xf32>
    %223 = arith.maximumf %221, %222 : vector<8x32xf32>
    %c56 = arith.constant 56 : index
    %c0_7 = arith.constant 0 : index
    %224 = vector.load %arg2[%c56, %c0_7] : memref<144x128xf32, #tpu.memory_space<vmem>>, vector<32x3xf32>
    %c88 = arith.constant 88 : index
    %c0_8 = arith.constant 0 : index
    %225 = vector.load %arg2[%c88, %c0_8] : memref<144x128xf32, #tpu.memory_space<vmem>>, vector<1x3xf32>
    %226 = vector.extract_strided_slice %223 {offsets = [0, 0], sizes = [8, 1], strides = [1, 1]} : vector<8x32xf32> to vector<8x1xf32>
    %227 = vector.extract_strided_slice %224 {offsets = [0, 0], sizes = [1, 3], strides = [1, 1]} : vector<32x3xf32> to vector<1x3xf32>
    %228 = vector.broadcast %226 : vector<8x1xf32> to vector<8x3xf32>
    %229 = vector.broadcast %227 : vector<1x3xf32> to vector<8x3xf32>
    %230 = arith.mulf %228, %229 : vector<8x3xf32>
    %231 = vector.broadcast %225 : vector<1x3xf32> to vector<8x3xf32>
    %232 = arith.addf %231, %230 : vector<8x3xf32>
    %233 = vector.extract_strided_slice %223 {offsets = [0, 1], sizes = [8, 1], strides = [1, 1]} : vector<8x32xf32> to vector<8x1xf32>
    %234 = vector.extract_strided_slice %224 {offsets = [1, 0], sizes = [1, 3], strides = [1, 1]} : vector<32x3xf32> to vector<1x3xf32>
    %235 = vector.broadcast %233 : vector<8x1xf32> to vector<8x3xf32>
    %236 = vector.broadcast %234 : vector<1x3xf32> to vector<8x3xf32>
    %237 = arith.mulf %235, %236 : vector<8x3xf32>
    %238 = arith.addf %232, %237 : vector<8x3xf32>
    %239 = vector.extract_strided_slice %223 {offsets = [0, 2], sizes = [8, 1], strides = [1, 1]} : vector<8x32xf32> to vector<8x1xf32>
    %240 = vector.extract_strided_slice %224 {offsets = [2, 0], sizes = [1, 3], strides = [1, 1]} : vector<32x3xf32> to vector<1x3xf32>
    %241 = vector.broadcast %239 : vector<8x1xf32> to vector<8x3xf32>
    %242 = vector.broadcast %240 : vector<1x3xf32> to vector<8x3xf32>
    %243 = arith.mulf %241, %242 : vector<8x3xf32>
    %244 = arith.addf %238, %243 : vector<8x3xf32>
    %245 = vector.extract_strided_slice %223 {offsets = [0, 3], sizes = [8, 1], strides = [1, 1]} : vector<8x32xf32> to vector<8x1xf32>
    %246 = vector.extract_strided_slice %224 {offsets = [3, 0], sizes = [1, 3], strides = [1, 1]} : vector<32x3xf32> to vector<1x3xf32>
    %247 = vector.broadcast %245 : vector<8x1xf32> to vector<8x3xf32>
    %248 = vector.broadcast %246 : vector<1x3xf32> to vector<8x3xf32>
    %249 = arith.mulf %247, %248 : vector<8x3xf32>
    %250 = arith.addf %244, %249 : vector<8x3xf32>
    %251 = vector.extract_strided_slice %223 {offsets = [0, 4], sizes = [8, 1], strides = [1, 1]} : vector<8x32xf32> to vector<8x1xf32>
    %252 = vector.extract_strided_slice %224 {offsets = [4, 0], sizes = [1, 3], strides = [1, 1]} : vector<32x3xf32> to vector<1x3xf32>
    %253 = vector.broadcast %251 : vector<8x1xf32> to vector<8x3xf32>
    %254 = vector.broadcast %252 : vector<1x3xf32> to vector<8x3xf32>
    %255 = arith.mulf %253, %254 : vector<8x3xf32>
    %256 = arith.addf %250, %255 : vector<8x3xf32>
    %257 = vector.extract_strided_slice %223 {offsets = [0, 5], sizes = [8, 1], strides = [1, 1]} : vector<8x32xf32> to vector<8x1xf32>
    %258 = vector.extract_strided_slice %224 {offsets = [5, 0], sizes = [1, 3], strides = [1, 1]} : vector<32x3xf32> to vector<1x3xf32>
    %259 = vector.broadcast %257 : vector<8x1xf32> to vector<8x3xf32>
    %260 = vector.broadcast %258 : vector<1x3xf32> to vector<8x3xf32>
    %261 = arith.mulf %259, %260 : vector<8x3xf32>
    %262 = arith.addf %256, %261 : vector<8x3xf32>
    %263 = vector.extract_strided_slice %223 {offsets = [0, 6], sizes = [8, 1], strides = [1, 1]} : vector<8x32xf32> to vector<8x1xf32>
    %264 = vector.extract_strided_slice %224 {offsets = [6, 0], sizes = [1, 3], strides = [1, 1]} : vector<32x3xf32> to vector<1x3xf32>
    %265 = vector.broadcast %263 : vector<8x1xf32> to vector<8x3xf32>
    %266 = vector.broadcast %264 : vector<1x3xf32> to vector<8x3xf32>
    %267 = arith.mulf %265, %266 : vector<8x3xf32>
    %268 = arith.addf %262, %267 : vector<8x3xf32>
    %269 = vector.extract_strided_slice %223 {offsets = [0, 7], sizes = [8, 1], strides = [1, 1]} : vector<8x32xf32> to vector<8x1xf32>
    %270 = vector.extract_strided_slice %224 {offsets = [7, 0], sizes = [1, 3], strides = [1, 1]} : vector<32x3xf32> to vector<1x3xf32>
    %271 = vector.broadcast %269 : vector<8x1xf32> to vector<8x3xf32>
    %272 = vector.broadcast %270 : vector<1x3xf32> to vector<8x3xf32>
    %273 = arith.mulf %271, %272 : vector<8x3xf32>
    %274 = arith.addf %268, %273 : vector<8x3xf32>
    %275 = vector.extract_strided_slice %223 {offsets = [0, 8], sizes = [8, 1], strides = [1, 1]} : vector<8x32xf32> to vector<8x1xf32>
    %276 = vector.extract_strided_slice %224 {offsets = [8, 0], sizes = [1, 3], strides = [1, 1]} : vector<32x3xf32> to vector<1x3xf32>
    %277 = vector.broadcast %275 : vector<8x1xf32> to vector<8x3xf32>
    %278 = vector.broadcast %276 : vector<1x3xf32> to vector<8x3xf32>
    %279 = arith.mulf %277, %278 : vector<8x3xf32>
    %280 = arith.addf %274, %279 : vector<8x3xf32>
    %281 = vector.extract_strided_slice %223 {offsets = [0, 9], sizes = [8, 1], strides = [1, 1]} : vector<8x32xf32> to vector<8x1xf32>
    %282 = vector.extract_strided_slice %224 {offsets = [9, 0], sizes = [1, 3], strides = [1, 1]} : vector<32x3xf32> to vector<1x3xf32>
    %283 = vector.broadcast %281 : vector<8x1xf32> to vector<8x3xf32>
    %284 = vector.broadcast %282 : vector<1x3xf32> to vector<8x3xf32>
    %285 = arith.mulf %283, %284 : vector<8x3xf32>
    %286 = arith.addf %280, %285 : vector<8x3xf32>
    %287 = vector.extract_strided_slice %223 {offsets = [0, 10], sizes = [8, 1], strides = [1, 1]} : vector<8x32xf32> to vector<8x1xf32>
    %288 = vector.extract_strided_slice %224 {offsets = [10, 0], sizes = [1, 3], strides = [1, 1]} : vector<32x3xf32> to vector<1x3xf32>
    %289 = vector.broadcast %287 : vector<8x1xf32> to vector<8x3xf32>
    %290 = vector.broadcast %288 : vector<1x3xf32> to vector<8x3xf32>
    %291 = arith.mulf %289, %290 : vector<8x3xf32>
    %292 = arith.addf %286, %291 : vector<8x3xf32>
    %293 = vector.extract_strided_slice %223 {offsets = [0, 11], sizes = [8, 1], strides = [1, 1]} : vector<8x32xf32> to vector<8x1xf32>
    %294 = vector.extract_strided_slice %224 {offsets = [11, 0], sizes = [1, 3], strides = [1, 1]} : vector<32x3xf32> to vector<1x3xf32>
    %295 = vector.broadcast %293 : vector<8x1xf32> to vector<8x3xf32>
    %296 = vector.broadcast %294 : vector<1x3xf32> to vector<8x3xf32>
    %297 = arith.mulf %295, %296 : vector<8x3xf32>
    %298 = arith.addf %292, %297 : vector<8x3xf32>
    %299 = vector.extract_strided_slice %223 {offsets = [0, 12], sizes = [8, 1], strides = [1, 1]} : vector<8x32xf32> to vector<8x1xf32>
    %300 = vector.extract_strided_slice %224 {offsets = [12, 0], sizes = [1, 3], strides = [1, 1]} : vector<32x3xf32> to vector<1x3xf32>
    %301 = vector.broadcast %299 : vector<8x1xf32> to vector<8x3xf32>
    %302 = vector.broadcast %300 : vector<1x3xf32> to vector<8x3xf32>
    %303 = arith.mulf %301, %302 : vector<8x3xf32>
    %304 = arith.addf %298, %303 : vector<8x3xf32>
    %305 = vector.extract_strided_slice %223 {offsets = [0, 13], sizes = [8, 1], strides = [1, 1]} : vector<8x32xf32> to vector<8x1xf32>
    %306 = vector.extract_strided_slice %224 {offsets = [13, 0], sizes = [1, 3], strides = [1, 1]} : vector<32x3xf32> to vector<1x3xf32>
    %307 = vector.broadcast %305 : vector<8x1xf32> to vector<8x3xf32>
    %308 = vector.broadcast %306 : vector<1x3xf32> to vector<8x3xf32>
    %309 = arith.mulf %307, %308 : vector<8x3xf32>
    %310 = arith.addf %304, %309 : vector<8x3xf32>
    %311 = vector.extract_strided_slice %223 {offsets = [0, 14], sizes = [8, 1], strides = [1, 1]} : vector<8x32xf32> to vector<8x1xf32>
    %312 = vector.extract_strided_slice %224 {offsets = [14, 0], sizes = [1, 3], strides = [1, 1]} : vector<32x3xf32> to vector<1x3xf32>
    %313 = vector.broadcast %311 : vector<8x1xf32> to vector<8x3xf32>
    %314 = vector.broadcast %312 : vector<1x3xf32> to vector<8x3xf32>
    %315 = arith.mulf %313, %314 : vector<8x3xf32>
    %316 = arith.addf %310, %315 : vector<8x3xf32>
    %317 = vector.extract_strided_slice %223 {offsets = [0, 15], sizes = [8, 1], strides = [1, 1]} : vector<8x32xf32> to vector<8x1xf32>
    %318 = vector.extract_strided_slice %224 {offsets = [15, 0], sizes = [1, 3], strides = [1, 1]} : vector<32x3xf32> to vector<1x3xf32>
    %319 = vector.broadcast %317 : vector<8x1xf32> to vector<8x3xf32>
    %320 = vector.broadcast %318 : vector<1x3xf32> to vector<8x3xf32>
    %321 = arith.mulf %319, %320 : vector<8x3xf32>
    %322 = arith.addf %316, %321 : vector<8x3xf32>
    %323 = vector.extract_strided_slice %223 {offsets = [0, 16], sizes = [8, 1], strides = [1, 1]} : vector<8x32xf32> to vector<8x1xf32>
    %324 = vector.extract_strided_slice %224 {offsets = [16, 0], sizes = [1, 3], strides = [1, 1]} : vector<32x3xf32> to vector<1x3xf32>
    %325 = vector.broadcast %323 : vector<8x1xf32> to vector<8x3xf32>
    %326 = vector.broadcast %324 : vector<1x3xf32> to vector<8x3xf32>
    %327 = arith.mulf %325, %326 : vector<8x3xf32>
    %328 = arith.addf %322, %327 : vector<8x3xf32>
    %329 = vector.extract_strided_slice %223 {offsets = [0, 17], sizes = [8, 1], strides = [1, 1]} : vector<8x32xf32> to vector<8x1xf32>
    %330 = vector.extract_strided_slice %224 {offsets = [17, 0], sizes = [1, 3], strides = [1, 1]} : vector<32x3xf32> to vector<1x3xf32>
    %331 = vector.broadcast %329 : vector<8x1xf32> to vector<8x3xf32>
    %332 = vector.broadcast %330 : vector<1x3xf32> to vector<8x3xf32>
    %333 = arith.mulf %331, %332 : vector<8x3xf32>
    %334 = arith.addf %328, %333 : vector<8x3xf32>
    %335 = vector.extract_strided_slice %223 {offsets = [0, 18], sizes = [8, 1], strides = [1, 1]} : vector<8x32xf32> to vector<8x1xf32>
    %336 = vector.extract_strided_slice %224 {offsets = [18, 0], sizes = [1, 3], strides = [1, 1]} : vector<32x3xf32> to vector<1x3xf32>
    %337 = vector.broadcast %335 : vector<8x1xf32> to vector<8x3xf32>
    %338 = vector.broadcast %336 : vector<1x3xf32> to vector<8x3xf32>
    %339 = arith.mulf %337, %338 : vector<8x3xf32>
    %340 = arith.addf %334, %339 : vector<8x3xf32>
    %341 = vector.extract_strided_slice %223 {offsets = [0, 19], sizes = [8, 1], strides = [1, 1]} : vector<8x32xf32> to vector<8x1xf32>
    %342 = vector.extract_strided_slice %224 {offsets = [19, 0], sizes = [1, 3], strides = [1, 1]} : vector<32x3xf32> to vector<1x3xf32>
    %343 = vector.broadcast %341 : vector<8x1xf32> to vector<8x3xf32>
    %344 = vector.broadcast %342 : vector<1x3xf32> to vector<8x3xf32>
    %345 = arith.mulf %343, %344 : vector<8x3xf32>
    %346 = arith.addf %340, %345 : vector<8x3xf32>
    %347 = vector.extract_strided_slice %223 {offsets = [0, 20], sizes = [8, 1], strides = [1, 1]} : vector<8x32xf32> to vector<8x1xf32>
    %348 = vector.extract_strided_slice %224 {offsets = [20, 0], sizes = [1, 3], strides = [1, 1]} : vector<32x3xf32> to vector<1x3xf32>
    %349 = vector.broadcast %347 : vector<8x1xf32> to vector<8x3xf32>
    %350 = vector.broadcast %348 : vector<1x3xf32> to vector<8x3xf32>
    %351 = arith.mulf %349, %350 : vector<8x3xf32>
    %352 = arith.addf %346, %351 : vector<8x3xf32>
    %353 = vector.extract_strided_slice %223 {offsets = [0, 21], sizes = [8, 1], strides = [1, 1]} : vector<8x32xf32> to vector<8x1xf32>
    %354 = vector.extract_strided_slice %224 {offsets = [21, 0], sizes = [1, 3], strides = [1, 1]} : vector<32x3xf32> to vector<1x3xf32>
    %355 = vector.broadcast %353 : vector<8x1xf32> to vector<8x3xf32>
    %356 = vector.broadcast %354 : vector<1x3xf32> to vector<8x3xf32>
    %357 = arith.mulf %355, %356 : vector<8x3xf32>
    %358 = arith.addf %352, %357 : vector<8x3xf32>
    %359 = vector.extract_strided_slice %223 {offsets = [0, 22], sizes = [8, 1], strides = [1, 1]} : vector<8x32xf32> to vector<8x1xf32>
    %360 = vector.extract_strided_slice %224 {offsets = [22, 0], sizes = [1, 3], strides = [1, 1]} : vector<32x3xf32> to vector<1x3xf32>
    %361 = vector.broadcast %359 : vector<8x1xf32> to vector<8x3xf32>
    %362 = vector.broadcast %360 : vector<1x3xf32> to vector<8x3xf32>
    %363 = arith.mulf %361, %362 : vector<8x3xf32>
    %364 = arith.addf %358, %363 : vector<8x3xf32>
    %365 = vector.extract_strided_slice %223 {offsets = [0, 23], sizes = [8, 1], strides = [1, 1]} : vector<8x32xf32> to vector<8x1xf32>
    %366 = vector.extract_strided_slice %224 {offsets = [23, 0], sizes = [1, 3], strides = [1, 1]} : vector<32x3xf32> to vector<1x3xf32>
    %367 = vector.broadcast %365 : vector<8x1xf32> to vector<8x3xf32>
    %368 = vector.broadcast %366 : vector<1x3xf32> to vector<8x3xf32>
    %369 = arith.mulf %367, %368 : vector<8x3xf32>
    %370 = arith.addf %364, %369 : vector<8x3xf32>
    %371 = vector.extract_strided_slice %223 {offsets = [0, 24], sizes = [8, 1], strides = [1, 1]} : vector<8x32xf32> to vector<8x1xf32>
    %372 = vector.extract_strided_slice %224 {offsets = [24, 0], sizes = [1, 3], strides = [1, 1]} : vector<32x3xf32> to vector<1x3xf32>
    %373 = vector.broadcast %371 : vector<8x1xf32> to vector<8x3xf32>
    %374 = vector.broadcast %372 : vector<1x3xf32> to vector<8x3xf32>
    %375 = arith.mulf %373, %374 : vector<8x3xf32>
    %376 = arith.addf %370, %375 : vector<8x3xf32>
    %377 = vector.extract_strided_slice %223 {offsets = [0, 25], sizes = [8, 1], strides = [1, 1]} : vector<8x32xf32> to vector<8x1xf32>
    %378 = vector.extract_strided_slice %224 {offsets = [25, 0], sizes = [1, 3], strides = [1, 1]} : vector<32x3xf32> to vector<1x3xf32>
    %379 = vector.broadcast %377 : vector<8x1xf32> to vector<8x3xf32>
    %380 = vector.broadcast %378 : vector<1x3xf32> to vector<8x3xf32>
    %381 = arith.mulf %379, %380 : vector<8x3xf32>
    %382 = arith.addf %376, %381 : vector<8x3xf32>
    %383 = vector.extract_strided_slice %223 {offsets = [0, 26], sizes = [8, 1], strides = [1, 1]} : vector<8x32xf32> to vector<8x1xf32>
    %384 = vector.extract_strided_slice %224 {offsets = [26, 0], sizes = [1, 3], strides = [1, 1]} : vector<32x3xf32> to vector<1x3xf32>
    %385 = vector.broadcast %383 : vector<8x1xf32> to vector<8x3xf32>
    %386 = vector.broadcast %384 : vector<1x3xf32> to vector<8x3xf32>
    %387 = arith.mulf %385, %386 : vector<8x3xf32>
    %388 = arith.addf %382, %387 : vector<8x3xf32>
    %389 = vector.extract_strided_slice %223 {offsets = [0, 27], sizes = [8, 1], strides = [1, 1]} : vector<8x32xf32> to vector<8x1xf32>
    %390 = vector.extract_strided_slice %224 {offsets = [27, 0], sizes = [1, 3], strides = [1, 1]} : vector<32x3xf32> to vector<1x3xf32>
    %391 = vector.broadcast %389 : vector<8x1xf32> to vector<8x3xf32>
    %392 = vector.broadcast %390 : vector<1x3xf32> to vector<8x3xf32>
    %393 = arith.mulf %391, %392 : vector<8x3xf32>
    %394 = arith.addf %388, %393 : vector<8x3xf32>
    %395 = vector.extract_strided_slice %223 {offsets = [0, 28], sizes = [8, 1], strides = [1, 1]} : vector<8x32xf32> to vector<8x1xf32>
    %396 = vector.extract_strided_slice %224 {offsets = [28, 0], sizes = [1, 3], strides = [1, 1]} : vector<32x3xf32> to vector<1x3xf32>
    %397 = vector.broadcast %395 : vector<8x1xf32> to vector<8x3xf32>
    %398 = vector.broadcast %396 : vector<1x3xf32> to vector<8x3xf32>
    %399 = arith.mulf %397, %398 : vector<8x3xf32>
    %400 = arith.addf %394, %399 : vector<8x3xf32>
    %401 = vector.extract_strided_slice %223 {offsets = [0, 29], sizes = [8, 1], strides = [1, 1]} : vector<8x32xf32> to vector<8x1xf32>
    %402 = vector.extract_strided_slice %224 {offsets = [29, 0], sizes = [1, 3], strides = [1, 1]} : vector<32x3xf32> to vector<1x3xf32>
    %403 = vector.broadcast %401 : vector<8x1xf32> to vector<8x3xf32>
    %404 = vector.broadcast %402 : vector<1x3xf32> to vector<8x3xf32>
    %405 = arith.mulf %403, %404 : vector<8x3xf32>
    %406 = arith.addf %400, %405 : vector<8x3xf32>
    %407 = vector.extract_strided_slice %223 {offsets = [0, 30], sizes = [8, 1], strides = [1, 1]} : vector<8x32xf32> to vector<8x1xf32>
    %408 = vector.extract_strided_slice %224 {offsets = [30, 0], sizes = [1, 3], strides = [1, 1]} : vector<32x3xf32> to vector<1x3xf32>
    %409 = vector.broadcast %407 : vector<8x1xf32> to vector<8x3xf32>
    %410 = vector.broadcast %408 : vector<1x3xf32> to vector<8x3xf32>
    %411 = arith.mulf %409, %410 : vector<8x3xf32>
    %412 = arith.addf %406, %411 : vector<8x3xf32>
    %413 = vector.extract_strided_slice %223 {offsets = [0, 31], sizes = [8, 1], strides = [1, 1]} : vector<8x32xf32> to vector<8x1xf32>
    %414 = vector.extract_strided_slice %224 {offsets = [31, 0], sizes = [1, 3], strides = [1, 1]} : vector<32x3xf32> to vector<1x3xf32>
    %415 = vector.broadcast %413 : vector<8x1xf32> to vector<8x3xf32>
    %416 = vector.broadcast %414 : vector<1x3xf32> to vector<8x3xf32>
    %417 = arith.mulf %415, %416 : vector<8x3xf32>
    %418 = arith.addf %412, %417 : vector<8x3xf32>
    %419 = arith.negf %418 : vector<8x3xf32>
    %420 = math.exp %419 : vector<8x3xf32>
    %cst_9 = arith.constant 1.000000e+00 : f32
    %421 = vector.broadcast %cst_9 : f32 to vector<8x3xf32>
    %422 = arith.addf %421, %420 : vector<8x3xf32>
    %423 = arith.divf %421, %422 : vector<8x3xf32>
    %cst_10 = arith.constant 1.000000e+00 : f32
    %424 = vector.broadcast %cst_10 : f32 to vector<8x3xf32>
    %425 = arith.subf %424, %423 : vector<8x3xf32>
    %cst_11 = arith.constant 9.99999974E-6 : f32
    %426 = vector.broadcast %cst_11 : f32 to vector<8x3xf32>
    %427 = arith.addf %425, %426 : vector<8x3xf32>
    %cst_12 = arith.constant 1.000020e+00 : f32
    %428 = vector.broadcast %cst_12 : f32 to vector<8x3xf32>
    %429 = arith.divf %427, %428 : vector<8x3xf32>
    %cst_13 = arith.constant 9.99999974E-6 : f32
    %430 = vector.broadcast %cst_13 : f32 to vector<8x3xf32>
    %431 = arith.addf %423, %430 : vector<8x3xf32>
    %cst_14 = arith.constant 1.000020e+00 : f32
    %432 = vector.broadcast %cst_14 : f32 to vector<8x3xf32>
    %433 = arith.divf %431, %432 : vector<8x3xf32>
    %434 = vector.extract_strided_slice %429 {offsets = [0, 0], sizes = [8, 1], strides = [1, 1]} : vector<8x3xf32> to vector<8x1xf32>
    %435 = vector.extract_strided_slice %433 {offsets = [0, 0], sizes = [8, 1], strides = [1, 1]} : vector<8x3xf32> to vector<8x1xf32>
    %436 = vector.extract_strided_slice %429 {offsets = [0, 1], sizes = [8, 1], strides = [1, 1]} : vector<8x3xf32> to vector<8x1xf32>
    %437 = vector.extract_strided_slice %433 {offsets = [0, 1], sizes = [8, 1], strides = [1, 1]} : vector<8x3xf32> to vector<8x1xf32>
    %438 = vector.extract_strided_slice %429 {offsets = [0, 2], sizes = [8, 1], strides = [1, 1]} : vector<8x3xf32> to vector<8x1xf32>
    %439 = vector.extract_strided_slice %433 {offsets = [0, 2], sizes = [8, 1], strides = [1, 1]} : vector<8x3xf32> to vector<8x1xf32>
    %440 = arith.mulf %435, %436 : vector<8x1xf32>
    %441 = arith.mulf %440, %438 : vector<8x1xf32>
    %442 = arith.mulf %434, %437 : vector<8x1xf32>
    %443 = arith.mulf %442, %438 : vector<8x1xf32>
    %444 = arith.addf %441, %443 : vector<8x1xf32>
    %445 = arith.mulf %434, %436 : vector<8x1xf32>
    %446 = arith.mulf %445, %439 : vector<8x1xf32>
    %447 = arith.addf %444, %446 : vector<8x1xf32>
    %448 = arith.mulf %435, %437 : vector<8x1xf32>
    %449 = arith.mulf %448, %439 : vector<8x1xf32>
    %450 = arith.addf %447, %449 : vector<8x1xf32>
    %cst_15 = arith.constant 1.000000e+00 : f32
    %451 = vector.broadcast %cst_15 : f32 to vector<8x1xf32>
    %452 = arith.subf %451, %450 : vector<8x1xf32>
    %453 = tpu.concatenate %452, %450 in 1 : vector<8x1xf32>, vector<8x1xf32> -> vector<8x2xf32>
    %cst_16 = arith.constant 1.000000e-03 : f32
    %454 = vector.broadcast %cst_16 : f32 to vector<8x2xf32>
    %455 = arith.addf %453, %454 : vector<8x2xf32>
    %cst_17 = arith.constant 1.002000e+00 : f32
    %456 = vector.broadcast %cst_17 : f32 to vector<8x2xf32>
    %457 = arith.divf %455, %456 : vector<8x2xf32>
    %cst_18 = arith.constant 5.000000e-01 : f32
    %458 = vector.broadcast %cst_18 : f32 to vector<8x3xf32>
    %459 = arith.mulf %458, %418 : vector<8x3xf32>
    %460 = arith.addf %459, %2 : vector<8x3xf32>
    %cst_19 = arith.constant -5.000000e-01 : f32
    %461 = vector.broadcast %cst_19 : f32 to vector<8x3xf32>
    %462 = arith.mulf %461, %418 : vector<8x3xf32>
    %463 = arith.addf %462, %3 : vector<8x3xf32>
    %464 = arith.cmpf ogt, %463, %460 : vector<8x3xf32>
    %cst_20 = arith.constant 1.000000e+00 : f32
    %cst_21 = arith.constant 0.000000e+00 : f32
    %465 = vector.broadcast %cst_20 : f32 to vector<8x3xf32>
    %466 = vector.broadcast %cst_21 : f32 to vector<8x3xf32>
    %467 = arith.select %464, %465, %466 : vector<8x3xi1>, vector<8x3xf32>
    %c96 = arith.constant 96 : index
    %c0_22 = arith.constant 0 : index
    %468 = vector.load %arg2[%c96, %c0_22] : memref<144x128xf32, #tpu.memory_space<vmem>>, vector<3x6xf32>
    %c104 = arith.constant 104 : index
    %c0_23 = arith.constant 0 : index
    %469 = vector.load %arg2[%c104, %c0_23] : memref<144x128xf32, #tpu.memory_space<vmem>>, vector<1x6xf32>
    %470 = vector.extract_strided_slice %467 {offsets = [0, 0], sizes = [8, 1], strides = [1, 1]} : vector<8x3xf32> to vector<8x1xf32>
    %471 = vector.extract_strided_slice %468 {offsets = [0, 0], sizes = [1, 6], strides = [1, 1]} : vector<3x6xf32> to vector<1x6xf32>
    %472 = vector.broadcast %470 : vector<8x1xf32> to vector<8x6xf32>
    %473 = vector.broadcast %471 : vector<1x6xf32> to vector<8x6xf32>
    %474 = arith.mulf %472, %473 : vector<8x6xf32>
    %475 = vector.broadcast %469 : vector<1x6xf32> to vector<8x6xf32>
    %476 = arith.addf %475, %474 : vector<8x6xf32>
    %477 = vector.extract_strided_slice %467 {offsets = [0, 1], sizes = [8, 1], strides = [1, 1]} : vector<8x3xf32> to vector<8x1xf32>
    %478 = vector.extract_strided_slice %468 {offsets = [1, 0], sizes = [1, 6], strides = [1, 1]} : vector<3x6xf32> to vector<1x6xf32>
    %479 = vector.broadcast %477 : vector<8x1xf32> to vector<8x6xf32>
    %480 = vector.broadcast %478 : vector<1x6xf32> to vector<8x6xf32>
    %481 = arith.mulf %479, %480 : vector<8x6xf32>
    %482 = arith.addf %476, %481 : vector<8x6xf32>
    %483 = vector.extract_strided_slice %467 {offsets = [0, 2], sizes = [8, 1], strides = [1, 1]} : vector<8x3xf32> to vector<8x1xf32>
    %484 = vector.extract_strided_slice %468 {offsets = [2, 0], sizes = [1, 6], strides = [1, 1]} : vector<3x6xf32> to vector<1x6xf32>
    %485 = vector.broadcast %483 : vector<8x1xf32> to vector<8x6xf32>
    %486 = vector.broadcast %484 : vector<1x6xf32> to vector<8x6xf32>
    %487 = arith.mulf %485, %486 : vector<8x6xf32>
    %488 = arith.addf %482, %487 : vector<8x6xf32>
    %cst_24 = arith.constant 0.000000e+00 : f32
    %489 = vector.broadcast %cst_24 : f32 to vector<8x6xf32>
    %490 = arith.maximumf %488, %489 : vector<8x6xf32>
    %c112 = arith.constant 112 : index
    %c0_25 = arith.constant 0 : index
    %491 = vector.load %arg2[%c112, %c0_25] : memref<144x128xf32, #tpu.memory_space<vmem>>, vector<6x6xf32>
    %c120 = arith.constant 120 : index
    %c0_26 = arith.constant 0 : index
    %492 = vector.load %arg2[%c120, %c0_26] : memref<144x128xf32, #tpu.memory_space<vmem>>, vector<1x6xf32>
    %493 = vector.extract_strided_slice %490 {offsets = [0, 0], sizes = [8, 1], strides = [1, 1]} : vector<8x6xf32> to vector<8x1xf32>
    %494 = vector.extract_strided_slice %491 {offsets = [0, 0], sizes = [1, 6], strides = [1, 1]} : vector<6x6xf32> to vector<1x6xf32>
    %495 = vector.broadcast %493 : vector<8x1xf32> to vector<8x6xf32>
    %496 = vector.broadcast %494 : vector<1x6xf32> to vector<8x6xf32>
    %497 = arith.mulf %495, %496 : vector<8x6xf32>
    %498 = vector.broadcast %492 : vector<1x6xf32> to vector<8x6xf32>
    %499 = arith.addf %498, %497 : vector<8x6xf32>
    %500 = vector.extract_strided_slice %490 {offsets = [0, 1], sizes = [8, 1], strides = [1, 1]} : vector<8x6xf32> to vector<8x1xf32>
    %501 = vector.extract_strided_slice %491 {offsets = [1, 0], sizes = [1, 6], strides = [1, 1]} : vector<6x6xf32> to vector<1x6xf32>
    %502 = vector.broadcast %500 : vector<8x1xf32> to vector<8x6xf32>
    %503 = vector.broadcast %501 : vector<1x6xf32> to vector<8x6xf32>
    %504 = arith.mulf %502, %503 : vector<8x6xf32>
    %505 = arith.addf %499, %504 : vector<8x6xf32>
    %506 = vector.extract_strided_slice %490 {offsets = [0, 2], sizes = [8, 1], strides = [1, 1]} : vector<8x6xf32> to vector<8x1xf32>
    %507 = vector.extract_strided_slice %491 {offsets = [2, 0], sizes = [1, 6], strides = [1, 1]} : vector<6x6xf32> to vector<1x6xf32>
    %508 = vector.broadcast %506 : vector<8x1xf32> to vector<8x6xf32>
    %509 = vector.broadcast %507 : vector<1x6xf32> to vector<8x6xf32>
    %510 = arith.mulf %508, %509 : vector<8x6xf32>
    %511 = arith.addf %505, %510 : vector<8x6xf32>
    %512 = vector.extract_strided_slice %490 {offsets = [0, 3], sizes = [8, 1], strides = [1, 1]} : vector<8x6xf32> to vector<8x1xf32>
    %513 = vector.extract_strided_slice %491 {offsets = [3, 0], sizes = [1, 6], strides = [1, 1]} : vector<6x6xf32> to vector<1x6xf32>
    %514 = vector.broadcast %512 : vector<8x1xf32> to vector<8x6xf32>
    %515 = vector.broadcast %513 : vector<1x6xf32> to vector<8x6xf32>
    %516 = arith.mulf %514, %515 : vector<8x6xf32>
    %517 = arith.addf %511, %516 : vector<8x6xf32>
    %518 = vector.extract_strided_slice %490 {offsets = [0, 4], sizes = [8, 1], strides = [1, 1]} : vector<8x6xf32> to vector<8x1xf32>
    %519 = vector.extract_strided_slice %491 {offsets = [4, 0], sizes = [1, 6], strides = [1, 1]} : vector<6x6xf32> to vector<1x6xf32>
    %520 = vector.broadcast %518 : vector<8x1xf32> to vector<8x6xf32>
    %521 = vector.broadcast %519 : vector<1x6xf32> to vector<8x6xf32>
    %522 = arith.mulf %520, %521 : vector<8x6xf32>
    %523 = arith.addf %517, %522 : vector<8x6xf32>
    %524 = vector.extract_strided_slice %490 {offsets = [0, 5], sizes = [8, 1], strides = [1, 1]} : vector<8x6xf32> to vector<8x1xf32>
    %525 = vector.extract_strided_slice %491 {offsets = [5, 0], sizes = [1, 6], strides = [1, 1]} : vector<6x6xf32> to vector<1x6xf32>
    %526 = vector.broadcast %524 : vector<8x1xf32> to vector<8x6xf32>
    %527 = vector.broadcast %525 : vector<1x6xf32> to vector<8x6xf32>
    %528 = arith.mulf %526, %527 : vector<8x6xf32>
    %529 = arith.addf %523, %528 : vector<8x6xf32>
    %cst_27 = arith.constant 0.000000e+00 : f32
    %530 = vector.broadcast %cst_27 : f32 to vector<8x6xf32>
    %531 = arith.maximumf %529, %530 : vector<8x6xf32>
    %c128 = arith.constant 128 : index
    %c0_28 = arith.constant 0 : index
    %532 = vector.load %arg2[%c128, %c0_28] : memref<144x128xf32, #tpu.memory_space<vmem>>, vector<6x3xf32>
    %c136 = arith.constant 136 : index
    %c0_29 = arith.constant 0 : index
    %533 = vector.load %arg2[%c136, %c0_29] : memref<144x128xf32, #tpu.memory_space<vmem>>, vector<1x3xf32>
    %534 = vector.extract_strided_slice %531 {offsets = [0, 0], sizes = [8, 1], strides = [1, 1]} : vector<8x6xf32> to vector<8x1xf32>
    %535 = vector.extract_strided_slice %532 {offsets = [0, 0], sizes = [1, 3], strides = [1, 1]} : vector<6x3xf32> to vector<1x3xf32>
    %536 = vector.broadcast %534 : vector<8x1xf32> to vector<8x3xf32>
    %537 = vector.broadcast %535 : vector<1x3xf32> to vector<8x3xf32>
    %538 = arith.mulf %536, %537 : vector<8x3xf32>
    %539 = vector.broadcast %533 : vector<1x3xf32> to vector<8x3xf32>
    %540 = arith.addf %539, %538 : vector<8x3xf32>
    %541 = vector.extract_strided_slice %531 {offsets = [0, 1], sizes = [8, 1], strides = [1, 1]} : vector<8x6xf32> to vector<8x1xf32>
    %542 = vector.extract_strided_slice %532 {offsets = [1, 0], sizes = [1, 3], strides = [1, 1]} : vector<6x3xf32> to vector<1x3xf32>
    %543 = vector.broadcast %541 : vector<8x1xf32> to vector<8x3xf32>
    %544 = vector.broadcast %542 : vector<1x3xf32> to vector<8x3xf32>
    %545 = arith.mulf %543, %544 : vector<8x3xf32>
    %546 = arith.addf %540, %545 : vector<8x3xf32>
    %547 = vector.extract_strided_slice %531 {offsets = [0, 2], sizes = [8, 1], strides = [1, 1]} : vector<8x6xf32> to vector<8x1xf32>
    %548 = vector.extract_strided_slice %532 {offsets = [2, 0], sizes = [1, 3], strides = [1, 1]} : vector<6x3xf32> to vector<1x3xf32>
    %549 = vector.broadcast %547 : vector<8x1xf32> to vector<8x3xf32>
    %550 = vector.broadcast %548 : vector<1x3xf32> to vector<8x3xf32>
    %551 = arith.mulf %549, %550 : vector<8x3xf32>
    %552 = arith.addf %546, %551 : vector<8x3xf32>
    %553 = vector.extract_strided_slice %531 {offsets = [0, 3], sizes = [8, 1], strides = [1, 1]} : vector<8x6xf32> to vector<8x1xf32>
    %554 = vector.extract_strided_slice %532 {offsets = [3, 0], sizes = [1, 3], strides = [1, 1]} : vector<6x3xf32> to vector<1x3xf32>
    %555 = vector.broadcast %553 : vector<8x1xf32> to vector<8x3xf32>
    %556 = vector.broadcast %554 : vector<1x3xf32> to vector<8x3xf32>
    %557 = arith.mulf %555, %556 : vector<8x3xf32>
    %558 = arith.addf %552, %557 : vector<8x3xf32>
    %559 = vector.extract_strided_slice %531 {offsets = [0, 4], sizes = [8, 1], strides = [1, 1]} : vector<8x6xf32> to vector<8x1xf32>
    %560 = vector.extract_strided_slice %532 {offsets = [4, 0], sizes = [1, 3], strides = [1, 1]} : vector<6x3xf32> to vector<1x3xf32>
    %561 = vector.broadcast %559 : vector<8x1xf32> to vector<8x3xf32>
    %562 = vector.broadcast %560 : vector<1x3xf32> to vector<8x3xf32>
    %563 = arith.mulf %561, %562 : vector<8x3xf32>
    %564 = arith.addf %558, %563 : vector<8x3xf32>
    %565 = vector.extract_strided_slice %531 {offsets = [0, 5], sizes = [8, 1], strides = [1, 1]} : vector<8x6xf32> to vector<8x1xf32>
    %566 = vector.extract_strided_slice %532 {offsets = [5, 0], sizes = [1, 3], strides = [1, 1]} : vector<6x3xf32> to vector<1x3xf32>
    %567 = vector.broadcast %565 : vector<8x1xf32> to vector<8x3xf32>
    %568 = vector.broadcast %566 : vector<1x3xf32> to vector<8x3xf32>
    %569 = arith.mulf %567, %568 : vector<8x3xf32>
    %570 = arith.addf %564, %569 : vector<8x3xf32>
    %571 = arith.negf %570 : vector<8x3xf32>
    %572 = math.exp %571 : vector<8x3xf32>
    %cst_30 = arith.constant 1.000000e+00 : f32
    %573 = vector.broadcast %cst_30 : f32 to vector<8x3xf32>
    %574 = arith.addf %573, %572 : vector<8x3xf32>
    %575 = arith.divf %573, %574 : vector<8x3xf32>
    %cst_31 = arith.constant 1.000000e-03 : f32
    %576 = vector.broadcast %cst_31 : f32 to vector<8x3xf32>
    %577 = arith.addf %575, %576 : vector<8x3xf32>
    %cst_32 = arith.constant 1.003000e+00 : f32
    %578 = vector.broadcast %cst_32 : f32 to vector<8x3xf32>
    %579 = arith.divf %577, %578 : vector<8x3xf32>
    %cst_33 = arith.constant 0.000000e+00 : f32
    %580 = vector.broadcast %cst_33 : f32 to vector<8x128xf32>
    %c0_34 = arith.constant 0 : index
    %c0_35 = arith.constant 0 : index
    %581 = vector.load %arg3[%c0_34, %c0_35] : memref<8x128xf32, #tpu.memory_space<vmem>>, vector<8x128xf32>
    tpu.vector_store %arg3[%c0_34, %c0_35], %580 {strides = array<i32>} : memref<8x128xf32, #tpu.memory_space<vmem>>, vector<8x128xf32>,
    %c0_36 = arith.constant 0 : index
    %c0_37 = arith.constant 0 : index
    %582 = vector.load %arg3[%c0_36, %c0_37] : memref<8x128xf32, #tpu.memory_space<vmem>>, vector<8x2xf32>
    tpu.vector_store %arg3[%c0_36, %c0_37], %457 {strides = array<i32>} : memref<8x128xf32, #tpu.memory_space<vmem>>, vector<8x2xf32>,
    %c0_38 = arith.constant 0 : index
    %c2 = arith.constant 2 : index
    %583 = vector.load %arg3[%c0_38, %c2] : memref<8x128xf32, #tpu.memory_space<vmem>>, vector<8x3xf32>
    tpu.vector_store %arg3[%c0_38, %c2], %579 {strides = array<i32>} : memref<8x128xf32, #tpu.memory_space<vmem>>, vector<8x3xf32>,
    %c0_39 = arith.constant 0 : index
    %c5 = arith.constant 5 : index
    %584 = vector.load %arg3[%c0_39, %c5] : memref<8x128xf32, #tpu.memory_space<vmem>>, vector<8x3xf32>
    tpu.vector_store %arg3[%c0_39, %c5], %418 {strides = array<i32>} : memref<8x128xf32, #tpu.memory_space<vmem>>, vector<8x3xf32>,
    %c0_40 = arith.constant 0 : index
    %c8_41 = arith.constant 8 : index
    %585 = vector.load %arg3[%c0_40, %c8_41] : memref<8x128xf32, #tpu.memory_space<vmem>>, vector<8x3xf32>
    tpu.vector_store %arg3[%c0_40, %c8_41], %467 {strides = array<i32>} : memref<8x128xf32, #tpu.memory_space<vmem>>, vector<8x3xf32>,
    return
  }
  func.func @transform_0(%arg0: i32) -> (i32, i32) {
    %c0_i32 = arith.constant 0 : i32
    %c0_i32_0 = arith.constant 0 : i32
    return %arg0, %c0_i32 : i32, i32
  }
  func.func @transform_1(%arg0: i32) -> (i32, i32) {
    %c0_i32 = arith.constant 0 : i32
    %c0_i32_0 = arith.constant 0 : i32
    %c0_i32_1 = arith.constant 0 : i32
    return %c0_i32, %c0_i32_0 : i32, i32
  }
  func.func @transform_2(%arg0: i32) -> (i32, i32) {
    %c0_i32 = arith.constant 0 : i32
    %c0_i32_0 = arith.constant 0 : i32
    return %arg0, %c0_i32 : i32, i32
  }
}

</mosaic_0001>

<bundles_post_ra>
// kernel: tpu_custom_call.1
= control target key start
LH: loop header
LB: loop body
LE: loop exit
PB: predicated region body
PF: predicated region fallthrough
CT: control target
= control target key end

     0   :  { %7 = vsyncpa [#allocation3], 0  ;;  %s1745_s0 = inlined_call_operand.hbm [shape: f32[16,9], index: 0, kind: input, shape index: {}]   ;;  %s1746_s1 = inlined_call_operand.hbm [shape: f32[144,128], index: 1, kind: input, shape index: {}]   ;;  %s1747_s2 = inlined_call_operand.hbm [shape: f32[16,128], index: 2, kind: output, shape index: {}]  }
   0x1   :  { %9 = vsyncpa [#allocation3 + $0x1], 0 }
   0x2   :  { %10 = vsyncpa [#allocation6], 0 }
   0x3   :  { %11 = vsyncpa [#allocation4], 0 }
   0x4   :  { %13 = vsyncpa [#allocation4 + $0x1], 0  ;;  %s1429_s9 = smov 0   ;;  %s1431_s10 = smov 0  }
   0x5   :  { %s1433_s11 = smov 0   ;;  %s1435_s12 = smov 0  }
   0x6 LB: > { %s108_s15 = sshll.u32 %s1746_s1, 4  ;;  %s1453_s16 = sadd.s32 4294967295, %s1365_s12   ;;  %s1365_s12 = sphi %s1435_s12, %s1757_s12   ;;  %s1361_s11 = sphi %s1433_s11, %s1756_s11   ;;  %s1357_s10 = sphi %s1431_s10, %s1755_s10   ;;  %s1353_s9 = sphi %s1429_s9, %s1754_s9   ;;  %s109_s15 = int_to_ptr.hbm [resolvable:$true] %s108_s15 }
   0x7   : > { %p1016_p0 = scmp.ge.s32.totalorder %s1365_s12, 1  ;;  %p40_p1 = scmp.eq.s32.totalorder %s1453_s16, 0 }
   0x8   : > { %p97_p2 = scmp.lt.s32.totalorder %s1365_s12, 3  ;;  %s1367_s18 = smov [#allocation5]  }
   0x9   : > { %s110_s19 = sshll.u32 %s1367_s18, 4  ;;  %s1368_s20 = smov 128   ;;  %s111_s19 = int_to_ptr.vmem [resolvable:$true] %s110_s19 }
   0xa   : > { %p1458_p3 = pnand %p1016_p0, %p97_p2  ;;  %s1369_s21 = smov 8  }
   0xb   : > { %s1015_s22 = sadd.s32 4294967294, %s1365_s12   ;;  %s1469_s23 = sadd.s32 1, %s1365_s12  }
   0xc   : > { %p1039_p4 = pneg %p1458_p3  ;;  %s26_s24 = sadd.s32 1, %s1361_s11 }
   0xd   : > { %s23_s25 = ssub.s32 %s1365_s12, %s1469_s23  ;;  %p33_p7 = scmp.ne.s32.totalorder %s1361_s11, %s1357_s10 }
   0xe   : > { %p1040_p6 = pnand %p1039_p4, %p40_p1  ;;  %p24_p8 = scmp.eq.s32.totalorder %s23_s25, 0 }
   0xf   : > { %p34_p9 = scmp.eq.s32.totalorder %s1365_s12, 0  ;;  %p39_p10 = scmp.ne.s32.totalorder %s1357_s10, %s1353_s9 }
  0x10   : > { %1042 = dma.hbm_to_vmem [thread:$0]  (!%p1040_p6), %s109_s15, 2304, %s111_s19, [#allocation6], %s1368_s20, %s1368_s20, %s1369_s21  }
  0x11   : > { %p84_p11 = scmp.eq.s32.totalorder %s1453_s16, 1  ;;  %p1485_p12 = por %p40_p1, %p39_p10 }
  0x12   : > { %s1481_s26 = scalar_select %p24_p8, %s1361_s11, %s26_s24  }
  0x13   : > { %p1489_p13 = por %p84_p11, %p33_p7  ;;  %p90_p0 = scmp.eq.s32.totalorder %s1015_s22, 1 }
  0x14   : > { %p35_p2 = por %p34_p9, %p33_p7  ;;  %s124_s29 = sand.u32 1, %s1361_s11  }
  0x15   : > { %p1494_p4 = por %p90_p0, %p39_p10  ;;  %p1052_p6 = scmp.lt.s32.totalorder %s1365_s12, 2 }
  0x16   : > { %s1019_s3 = sshll.u32 %s124_s29, 3  ;;  %s1020_s4 = sshll.u32 %s1365_s12, 3 }
  0x17   : > { %s132_s7 = scalar_lea.hbm %s1745_s0, %s1020_s4  ;;  %s128_s13 = scalar_lea.vmem [#allocation2], %s1019_s3 }
  0x18   : > { %s134_s8 = sshll.u32 %s132_s7, 4  ;;  %s136_s14 = sshll.u32 %s128_s13, 4  ;;  %s135_s8 = int_to_ptr.hbm [resolvable:$true] %s134_s8  ;;  %s137_s14 = int_to_ptr.vmem [resolvable:$true] %s136_s14 }
  0x19   : > { %p1503_p8 = pnand %p1052_p6, %p35_p2  ;;  %s125_s18 = scalar_lea.sflag [#allocation3], %s124_s29 }
  0x1a   : > { %s1265_s19 = sshra.s32 %s135_s8, 4  ;;  %s1272_s24 = scalar_lea.hbm %s1745_s0, 16  ;;  %s1266_s19 = int_to_ptr.hbm [resolvable:$true] %s1265_s19 }
  0x1b   : > { %s1267_s20 = scalar_lea.hbm %s1266_s19, 8  ;;  %p1269_p9 = pneg %p1503_p8 }
  0x1c   : > { %p1268_p7 = scmp.ne.s32.totalorder %s1266_s19, %s1267_s20  ;;  %p1273_p0 = scmp.lt.s32.totalorder %s1266_s19, %s1745_s0 }
  0x1d   : > { %p1274_p2 = scmp.lt.s32.totalorder %s1272_s24, %s1267_s20 }
  0x1e   : > { %p1270_p10 = pnand %p1269_p9, %p1268_p7 }
  0x1f   : > { %p1275_p6 = por %p1274_p2, %p1273_p0 }
  0x20   : > { %p1271_p11 = pneg %p1270_p10 }
  0x22   : > { %p1276_p5 = pnand %p1275_p6, %p1271_p11 }
  0x24   : > { %1279 = shalt.err (!%p1276_p5)
}
  0x25   : > { %1046 = dma.hbm_to_vmem [thread:$0]  (!%p1503_p8), %s135_s8, 128, %s137_s14, %s125_s18  }
  0x26   : > { %145 = sbr.rel (%p1458_p3) target bundleno = 1196 (0x4ac), region = 28  ;;  %s1520_s29 = sand.u32 (!%p1458_p3), 1, %s1357_s10  }
  0x27   : > { %s1022_s4 = sshll.u32 (!%p1458_p3), %s1520_s29, 3  ;;  %s148_s5 = scalar_lea.sflag (!%p1458_p3), [#allocation3], %s1520_s29 }
  0x28   : > { %s151_s6 = scalar_lea.vmem (!%p1458_p3), [#allocation2], %s1022_s4 }
  0x2b   : > { %1340 = dma.done.wait (%p1485_p12), %s148_s5, 128  }
  0x2c   : > { %1342 = vsyncadd (%p1485_p12), %s148_s5, 4294967168 }
  0x2d   : > { %1344 = dma.done.wait (%p40_p1), [#allocation6], 2304  }
  0x2e   : > { %1346 = vsyncadd (%p40_p1), [#allocation6], 4294964992  ;;  %v1370_v0 = vmov 0   ;;  %v1371_v1 = vmov 2   ;;  %v1372_v2 = vmov 1   ;;  %v1537_v3 = vld [vmem:[%s151_s6] sm:$0xff] }
  0x2f   : > { %1134 = vset.pattern.permute.xlu0 %v1370_v0  ;;  %1136 = vset.pattern.permute.xlu1 %v1371_v1  ;;  %v1373_v4 = vmov 5   ;;  %v179_v5 = vld [vmem:[#allocation5] sm:$0x7]  ;;  %v1215_v8 = vld [vmem:[#allocation5 + $0x8] ss:$0 sm:$0xff]  ;;  %v1374_v20 = vmov 10  }
  0x30   : > { %1138 = vset.pattern.permute.xlu2 %v1372_v2  ;;  %183 = vperm.xlu0 %1134, %v1537_v3   ;;  %v186_v7 = vperm.slane %v179_v5, 0  ;;  %v194_v10 = vperm.slane %v179_v5, 1  ;;  %v201_v11 = vperm.slane %v179_v5, 2  ;;  %v1375_v21 = vmov 3   ;;  %v205_v52 = vld [vmem:[#allocation5 + $0x10] sm:$0xff]  ;;  %s1402_s17 = smov 122  }
  0x31   : > { %198 = vperm.xlu1 %1136, %v1537_v3   ;;  %v1376_v22 = vmov 15   ;;  %v1377_v23 = vmov 4   ;;  %v1378_v24 = vmov 6   ;;  %v1379_v25 = vmov 20   ;;  %v1216_v55 = vld [vmem:[#allocation5 + $0x30] ss:$0 sm:$0xff] }
  0x32   : > { %v1380_v26 = vmov 7   ;;  %v1381_v27 = vmov 8   ;;  %v1382_v28 = vmov 25   ;;  %v1383_v29 = vmov 9   ;;  %s1403_s27 = smov 125   ;;  %s1681_s7 = scalar_lea.vmem [#allocation7], %s1022_s4 }
  0x33   : > { %v1384_v30 = vmov 11   ;;  %v1385_v31 = vmov 30   ;;  %v1386_v32 = vmov 12   ;;  %v1387_v33 = vmov 13   ;;  %s1406_s8 = smov 126   ;;  %s1407_s13 = smov 127  }
  0x34   : > { %v1388_v34 = vmov 14   ;;  %v1389_v35 = vmov 16   ;;  %v1390_v36 = vmov 17   ;;  %v1391_v37 = vmov 18   ;;  %s1408_s14 = smov 5   ;;  %s1410_s15 = smov 1  }
  0x35   : > { %v1392_v38 = vmov 19   ;;  %v1393_v39 = vmov 21   ;;  %v1394_v40 = vmov 22   ;;  %v1395_v41 = vmov 23   ;;  %s1411_s18 = smov 8   ;;  %s1412_s19 = smov 2  }
  0x36   : > { %v1396_v42 = vmov 24   ;;  %v1397_v43 = vmov 26   ;;  %v1398_v45 = vmov 27   ;;  %v1399_v46 = vmov 28   ;;  %s1028_s20 = sshll.u32 %s1453_s16, 3  ;;  %s932_s25 = sshll.u32 %s1681_s7, 4  ;;  %s933_s25 = int_to_ptr.vmem [resolvable:$true] %s932_s25 }
  0x37   : > { %v1400_v48 = vmov 29   ;;  %v1401_v49 = vmov 31   ;;  %v215_v53 = vperm.slane %v205_v52, 0  ;;  %v223_v57 = vperm.slane %v205_v52, 1  ;;  %s930_s24 = scalar_lea.hbm %s1747_s2, %s1028_s20  ;;  %s920_s4 = scalar_lea.sflag [#allocation4], %s1520_s29 }
  0x38   : > { %1135 = vset.pattern.permute.xlu0 %v1372_v2  ;;  %v230_v61 = vperm.slane %v205_v52, 2  ;;  %v237_v62 = vperm.slane %v205_v52, 3  ;;  %vm729_vm11 = vcmask 7168   ;;  %vm900_vm13 = vcmask 15360   ;;  %s934_s3 = sshll.u32 %s930_s24, 4  ;;  %s935_s3 = int_to_ptr.hbm [resolvable:$true] %s934_s3 }
  0x39   : > { %1137 = vset.pattern.permute.xlu1 %v1370_v0  ;;  %191 = vperm.xlu0 %1135, %v1537_v3   ;;  %vm906_vm14 = vcmask 39952   ;;  %vm912_vm15 = vcmask 64552   ;;  %s1309_s16 = sshra.s32 %s935_s3, 4  ;;  %s1310_s16 = int_to_ptr.hbm [resolvable:$true] %s1309_s16 }
  0x3a   : > { %s1311_s5 = scalar_lea.hbm %s1310_s16, 8  ;;  %p1316_p12 = scmp.lt.s32.totalorder %s1310_s16, %s1747_s2 }
  0x3b   : > { %p1312_p1 = scmp.ne.s32.totalorder %s1310_s16, %s1311_s5 }
  0x3d   : > { %p1313_p3 = pnand %p1312_p1, %p1489_p13 }
  0x3f   : > { %p1314_p5 = pneg %p1313_p3 }
  0x41   : > { %1142 = vset.pattern.permute.xlu0 %v1373_v4 }
  0xa2   : > { %v184_v6 = vpop.permute.xlu0 %183 }
  0xa3   : > { %v187_v9 = vmul.f32 %v186_v7, %v184_v6  ;;  %v199_v12 = vpop.permute.xlu1 %198 }
  0xa4   : > { %v202_v16 = vmul.f32 %v201_v11, %v199_v12 }
  0xa5   : > { %v189_v14 = vadd.f32 %v1215_v8, %v187_v9  ;;  %v244_v8 = vperm.slane %v205_v52, 4 }
  0xab   : > { %v192_v13 = vpop.permute.xlu0 %191 }
  0xac   : > { %v195_v15 = vmul.f32 %v194_v10, %v192_v13  ;;  %v251_v13 = vperm.slane %v205_v52, 5 }
  0xae   : > { %v196_v17 = vadd.f32 %v195_v15, %v189_v14  ;;  %v258_v14 = vperm.slane %v205_v52, 6 }
  0xb0   : > { %v203_v18 = vadd.f32 %v202_v16, %v196_v17 }
  0xb2   : > { %v1545_v19 = vmax.f32 %v203_v18, 0.0 }
  0xb4   : > { %248 = vperm.xlu0 %1142, %v1545_v19   ;;  %220 = vperm.xlu2 %1138, %v1545_v19  }
  0xb5   : > { %212 = vperm.xlu1 %1137, %v1545_v19  }
  0xbc   : > { %1147 = vset.pattern.permute.xlu0 %v1374_v20  ;;  %1139 = vset.pattern.permute.xlu2 %v1371_v1 }
  0xbd   : > { %1140 = vset.pattern.permute.xlu1 %v1375_v21  ;;  %283 = vperm.xlu0 %1147, %v1545_v19  }
  0xbe   : > { %227 = vperm.xlu2 %1139, %v1545_v19   ;;  %234 = vperm.xlu1 %1140, %v1545_v19  }
  0xc5   : > { %1152 = vset.pattern.permute.xlu0 %v1376_v22 }
  0xc6   : > { %1141 = vset.pattern.permute.xlu2 %v1377_v23  ;;  %1143 = vset.pattern.permute.xlu1 %v1378_v24 }
  0xc7   : > { %318 = vperm.xlu0 %1152, %v1545_v19   ;;  %241 = vperm.xlu2 %1141, %v1545_v19  }
  0xc8   : > { %255 = vperm.xlu1 %1143, %v1545_v19  }
  0xcf   : > { %1157 = vset.pattern.permute.xlu0 %v1379_v25  ;;  %1144 = vset.pattern.permute.xlu2 %v1380_v26 }
  0xd0   : > { %1145 = vset.pattern.permute.xlu1 %v1381_v27  ;;  %353 = vperm.xlu0 %1157, %v1545_v19  }
  0xd1   : > { %262 = vperm.xlu2 %1144, %v1545_v19   ;;  %269 = vperm.xlu1 %1145, %v1545_v19  }
  0xd8   : > { %1162 = vset.pattern.permute.xlu0 %v1382_v28 }
  0xd9   : > { %1146 = vset.pattern.permute.xlu2 %v1383_v29  ;;  %1148 = vset.pattern.permute.xlu1 %v1384_v30 }
  0xda   : > { %388 = vperm.xlu0 %1162, %v1545_v19   ;;  %276 = vperm.xlu2 %1146, %v1545_v19  }
  0xdb   : > { %290 = vperm.xlu1 %1148, %v1545_v19  }
  0xe2   : > { %1167 = vset.pattern.permute.xlu0 %v1385_v31  ;;  %1149 = vset.pattern.permute.xlu2 %v1386_v32 }
  0xe3   : > { %1150 = vset.pattern.permute.xlu1 %v1387_v33  ;;  %423 = vperm.xlu0 %1167, %v1545_v19  }
  0xe4   : > { %297 = vperm.xlu2 %1149, %v1545_v19   ;;  %304 = vperm.xlu1 %1150, %v1545_v19  }
  0xeb   : > { %1172 = vset.pattern.permute.xlu0 %v1375_v21 }
  0xec   : > { %1151 = vset.pattern.permute.xlu2 %v1388_v34  ;;  %1153 = vset.pattern.permute.xlu1 %v1389_v35 }
  0xed   : > { %311 = vperm.xlu2 %1151, %v1545_v19   ;;  %325 = vperm.xlu1 %1153, %v1545_v19  }
  0xf5   : > { %1154 = vset.pattern.permute.xlu2 %v1390_v36  ;;  %1155 = vset.pattern.permute.xlu1 %v1391_v37 }
  0xf6   : > { %332 = vperm.xlu2 %1154, %v1545_v19   ;;  %339 = vperm.xlu1 %1155, %v1545_v19  }
  0xfe   : > { %1156 = vset.pattern.permute.xlu2 %v1392_v38  ;;  %1158 = vset.pattern.permute.xlu1 %v1393_v39 }
  0xff   : > { %346 = vperm.xlu2 %1156, %v1545_v19   ;;  %360 = vperm.xlu1 %1158, %v1545_v19  }
 0x107   : > { %1159 = vset.pattern.permute.xlu2 %v1394_v40  ;;  %1160 = vset.pattern.permute.xlu1 %v1395_v41 }
 0x108   : > { %367 = vperm.xlu2 %1159, %v1545_v19   ;;  %374 = vperm.xlu1 %1160, %v1545_v19  }
 0x10e   : > { %v221_v44 = vpop.permute.xlu2 %220 }
 0x10f   : > { %v224_v60 = vmul.f32 %v223_v57, %v221_v44  ;;  %v265_v44 = vperm.slane %v205_v52, 7 }
 0x110   : > { %1161 = vset.pattern.permute.xlu2 %v1396_v42  ;;  %1163 = vset.pattern.permute.xlu1 %v1397_v43 }
 0x111   : > { %381 = vperm.xlu2 %1161, %v1545_v19   ;;  %395 = vperm.xlu1 %1163, %v1545_v19  }
 0x118   : > { %v228_v47 = vpop.permute.xlu2 %227 }
 0x119   : > { %1164 = vset.pattern.permute.xlu2 %v1398_v45  ;;  %1165 = vset.pattern.permute.xlu1 %v1399_v46  ;;  %v231_v6 = vmul.f32 %v230_v61, %v228_v47 }
 0x11a   : > { %402 = vperm.xlu2 %1164, %v1545_v19   ;;  %409 = vperm.xlu1 %1165, %v1545_v19  }
 0x121   : > { %v242_v51 = vpop.permute.xlu2 %241 }
 0x122   : > { %1166 = vset.pattern.permute.xlu2 %v1400_v48  ;;  %1168 = vset.pattern.permute.xlu1 %v1401_v49  ;;  %v245_v12 = vmul.f32 %v244_v8, %v242_v51 }
 0x123   : > { %416 = vperm.xlu2 %1166, %v1545_v19   ;;  %430 = vperm.xlu1 %1168, %v1545_v19  }
 0x126   : > { %v249_v15 = vpop.permute.xlu0 %248 }
 0x127   : > { %v213_v50 = vpop.permute.xlu1 %212  ;;  %v252_v18 = vmul.f32 %v251_v13, %v249_v15 }
 0x128   : > { %v216_v56 = vmul.f32 %v215_v53, %v213_v50  ;;  %v206_v50 = vld [vmem:[#allocation5 + $0x18] sm:$0xff] }
 0x129   : > { %v286_v51 = vperm.slane %v206_v50, 2  ;;  %v300_v52 = vperm.slane %v206_v50, 4 }
 0x12a   : > { %v218_v59 = vadd.f32 %v1216_v55, %v216_v56  ;;  %v272_v56 = vperm.slane %v206_v50, 0 }
 0x12b   : > { %1169 = vset.pattern.permute.xlu2 %v1370_v0  ;;  %1170 = vset.pattern.permute.xlu1 %v1372_v2  ;;  %v263_v58 = vpop.permute.xlu2 %262 }
 0x12c   : > { %v225_v63 = vadd.f32 %v224_v60, %v218_v59  ;;  %v266_v47 = vmul.f32 %v265_v44, %v263_v58  ;;  %v279_v59 = vperm.slane %v206_v50, 1 }
 0x12e   : > { %v232_v9 = vadd.f32 %v231_v6, %v225_v63 }
 0x12f   : > { %v284_v8 = vpop.permute.xlu0 %283 }
 0x130   : > { %v235_v54 = vpop.permute.xlu1 %234 }
 0x131   : > { %v238_v7 = vmul.f32 %v237_v62, %v235_v54 }
 0x133   : > { %v239_v11 = vadd.f32 %v238_v7, %v232_v9  ;;  %v293_v7 = vperm.slane %v206_v50, 3 }
 0x134   : > { %v277_v10 = vpop.permute.xlu2 %276 }
 0x135   : > { %v246_v16 = vadd.f32 %v245_v12, %v239_v11  ;;  %v280_v63 = vmul.f32 %v279_v59, %v277_v10  ;;  %v287_v11 = vmul.f32 %v286_v51, %v284_v8  ;;  %v321_v10 = vperm.slane %v206_v50, 7 }
 0x137   : > { %v253_v53 = vadd.f32 %v252_v18, %v246_v16  ;;  %v314_v18 = vperm.slane %v206_v50, 6 }
 0x13a   : > { %v256_v5 = vpop.permute.xlu1 %255 }
 0x13b   : > { %v259_v19 = vmul.f32 %v258_v14, %v256_v5  ;;  %v307_v14 = vperm.slane %v206_v50, 5 }
 0x13d   : > { %v260_v57 = vadd.f32 %v259_v19, %v253_v53 }
 0x13e   : > { %v298_v55 = vpop.permute.xlu2 %297 }
 0x13f   : > { %v267_v60 = vadd.f32 %v266_v47, %v260_v57  ;;  %v301_v16 = vmul.f32 %v300_v52, %v298_v55 }
 0x143   : > { %v270_v17 = vpop.permute.xlu1 %269 }
 0x144   : > { %v273_v54 = vmul.f32 %v272_v56, %v270_v17  ;;  %v207_v56 = vld [vmem:[#allocation5 + $0x20] sm:$0xff] }
 0x145   : > { %v328_v47 = vperm.slane %v207_v56, 0  ;;  %v335_v51 = vperm.slane %v207_v56, 1 }
 0x146   : > { %v274_v62 = vadd.f32 %v273_v54, %v267_v60  ;;  %v319_v54 = vpop.permute.xlu0 %318 }
 0x147   : > { %v312_v6 = vpop.permute.xlu2 %311  ;;  %v322_v60 = vmul.f32 %v321_v10, %v319_v54  ;;  %v377_v10 = vperm.slane %v207_v56, 7 }
 0x148   : > { %v281_v9 = vadd.f32 %v280_v63, %v274_v62  ;;  %v315_v57 = vmul.f32 %v314_v18, %v312_v6  ;;  %v363_v6 = vperm.slane %v207_v56, 5 }
 0x14a   : > { %v288_v13 = vadd.f32 %v287_v11, %v281_v9 }
 0x14d   : > { %v291_v61 = vpop.permute.xlu1 %290 }
 0x14e   : > { %v294_v5 = vmul.f32 %v293_v7, %v291_v61  ;;  %v342_v7 = vperm.slane %v207_v56, 2 }
 0x150   : > { %v295_v15 = vadd.f32 %v294_v5, %v288_v13  ;;  %v333_v58 = vpop.permute.xlu2 %332  ;;  %v349_v5 = vperm.slane %v207_v56, 3 }
 0x151   : > { %v336_v9 = vmul.f32 %v335_v51, %v333_v58 }
 0x152   : > { %v302_v19 = vadd.f32 %v301_v16, %v295_v15  ;;  %v354_v16 = vpop.permute.xlu0 %353 }
 0x156   : > { %v305_v12 = vpop.permute.xlu1 %304 }
 0x157   : > { %v308_v17 = vmul.f32 %v307_v14, %v305_v12  ;;  %v356_v14 = vperm.slane %v207_v56, 4 }
 0x159   : > { %v309_v44 = vadd.f32 %v308_v17, %v302_v19  ;;  %v347_v61 = vpop.permute.xlu2 %346  ;;  %v357_v18 = vmul.f32 %v356_v14, %v354_v16 }
 0x15a   : > { %v350_v50 = vmul.f32 %v349_v5, %v347_v61 }
 0x15b   : > { %v316_v59 = vadd.f32 %v315_v57, %v309_v44  ;;  %v370_v44 = vperm.slane %v207_v56, 6 }
 0x15d   : > { %v323_v63 = vadd.f32 %v322_v60, %v316_v59  ;;  %v208_v60 = vld [vmem:[#allocation5 + $0x28] sm:$0xff] }
 0x15e   : > { %v405_v14 = vperm.slane %v208_v60, 3 }
 0x15f   : > { %v326_v53 = vpop.permute.xlu1 %325 }
 0x160   : > { %v329_v62 = vmul.f32 %v328_v47, %v326_v53 }
 0x162   : > { %v330_v55 = vadd.f32 %v329_v62, %v323_v63  ;;  %v368_v52 = vpop.permute.xlu2 %367  ;;  %v384_v62 = vperm.slane %v208_v60, 0 }
 0x163   : > { %v371_v58 = vmul.f32 %v370_v44, %v368_v52  ;;  %v419_v52 = vperm.slane %v208_v60, 5 }
 0x164   : > { %v337_v12 = vadd.f32 %v336_v9, %v330_v55  ;;  %v389_v55 = vpop.permute.xlu0 %388 }
 0x168   : > { %v340_v8 = vpop.permute.xlu1 %339 }
 0x169   : > { %v343_v11 = vmul.f32 %v342_v7, %v340_v8  ;;  %v391_v7 = vperm.slane %v208_v60, 1  ;;  %v398_v8 = vperm.slane %v208_v60, 2 }
 0x16b   : > { %v344_v13 = vadd.f32 %v343_v11, %v337_v12  ;;  %v382_v57 = vpop.permute.xlu2 %381  ;;  %v392_v12 = vmul.f32 %v391_v7, %v389_v55 }
 0x16c   : > { %v385_v61 = vmul.f32 %v384_v62, %v382_v57  ;;  %v424_v57 = vpop.permute.xlu0 %423 }
 0x16d   : > { %v351_v17 = vadd.f32 %v350_v50, %v344_v13 }
 0x16f   : > { %v358_v53 = vadd.f32 %v357_v18, %v351_v17 }
 0x171   : > { %v361_v15 = vpop.permute.xlu1 %360 }
 0x172   : > { %v364_v19 = vmul.f32 %v363_v6, %v361_v15  ;;  %v412_v6 = vperm.slane %v208_v60, 4 }
 0x174   : > { %v365_v47 = vadd.f32 %v364_v19, %v358_v53  ;;  %v403_v9 = vpop.permute.xlu2 %402  ;;  %v426_v53 = vperm.slane %v208_v60, 6 }
 0x175   : > { %v406_v15 = vmul.f32 %v405_v14, %v403_v9 }
 0x176   : > { %v372_v51 = vadd.f32 %v371_v58, %v365_v47  ;;  %v427_v58 = vmul.f32 %v426_v53, %v424_v57 }
 0x17a   : > { %v375_v54 = vpop.permute.xlu1 %374 }
 0x17b   : > { %v378_v59 = vmul.f32 %v377_v10, %v375_v54  ;;  %v433_v54 = vperm.slane %v208_v60, 7 }
 0x17d   : > { %v379_v63 = vadd.f32 %v378_v59, %v372_v51  ;;  %v417_v17 = vpop.permute.xlu2 %416 }
 0x17e   : > { %v420_v10 = vmul.f32 %v419_v52, %v417_v17 }
 0x17f   : > { %v386_v11 = vadd.f32 %v385_v61, %v379_v63 }
 0x181   : > { %v393_v56 = vadd.f32 %v392_v12, %v386_v11 }
 0x183   : > { %v396_v5 = vpop.permute.xlu1 %395 }
 0x184   : > { %v399_v13 = vmul.f32 %v398_v8, %v396_v5  ;;  %v438_v5 = vld [vmem:[#allocation5 + $0x40] sm:$0xff] }
 0x185   : > { %v504_v14 = vperm.slane %v438_v5, 0 }
 0x186   : > { %v400_v50 = vadd.f32 %v399_v13, %v393_v56  ;;  %v511_v56 = vperm.slane %v438_v5, 1 }
 0x188   : > { %v407_v18 = vadd.f32 %v406_v15, %v400_v50 }
 0x18c   : > { %v410_v16 = vpop.permute.xlu1 %409 }
 0x18d   : > { %v413_v19 = vmul.f32 %v412_v6, %v410_v16 }
 0x18f   : > { %v414_v44 = vadd.f32 %v413_v19, %v407_v18  ;;  %v518_v18 = vperm.slane %v438_v5, 2 }
 0x191   : > { %v421_v47 = vadd.f32 %v420_v10, %v414_v44  ;;  %v525_v44 = vperm.slane %v438_v5, 3 }
 0x193   : > { %v428_v62 = vadd.f32 %v427_v58, %v421_v47 }
 0x195   : > { %v431_v59 = vpop.permute.xlu1 %430 }
 0x196   : > { %v434_v51 = vmul.f32 %v433_v54, %v431_v59  ;;  %v532_v54 = vperm.slane %v438_v5, 4 }
 0x198   : > { %v435_v63 = vadd.f32 %v434_v51, %v428_v62  ;;  %v539_v51 = vperm.slane %v438_v5, 5 }
 0x19a   : > { %v1611_v7 = vmax.f32 %v435_v63, 0.0 }
 0x19c   : > { %466 = vperm.xlu0 %1172, %v1611_v7   ;;  %452 = vperm.xlu1 %1170, %v1611_v7  }
 0x19d   : > { %444 = vperm.xlu2 %1169, %v1611_v7  }
 0x1a4   : > { %1177 = vset.pattern.permute.xlu0 %v1381_v27  ;;  %1173 = vset.pattern.permute.xlu1 %v1377_v23 }
 0x1a5   : > { %1171 = vset.pattern.permute.xlu2 %v1371_v1  ;;  %501 = vperm.xlu0 %1177, %v1611_v7  }
 0x1a6   : > { %473 = vperm.xlu1 %1173, %v1611_v7   ;;  %459 = vperm.xlu2 %1171, %v1611_v7  }
 0x1ad   : > { %1182 = vset.pattern.permute.xlu0 %v1387_v33 }
 0x1ae   : > { %1175 = vset.pattern.permute.xlu1 %v1378_v24  ;;  %1174 = vset.pattern.permute.xlu2 %v1373_v4 }
 0x1af   : > { %536 = vperm.xlu0 %1182, %v1611_v7   ;;  %487 = vperm.xlu1 %1175, %v1611_v7  }
 0x1b0   : > { %480 = vperm.xlu2 %1174, %v1611_v7  }
 0x1b7   : > { %1187 = vset.pattern.permute.xlu0 %v1391_v37  ;;  %1178 = vset.pattern.permute.xlu1 %v1383_v29 }
 0x1b8   : > { %1176 = vset.pattern.permute.xlu2 %v1380_v26  ;;  %571 = vperm.xlu0 %1187, %v1611_v7  }
 0x1b9   : > { %508 = vperm.xlu1 %1178, %v1611_v7   ;;  %494 = vperm.xlu2 %1176, %v1611_v7  }
 0x1c0   : > { %1192 = vset.pattern.permute.xlu0 %v1395_v41 }
 0x1c1   : > { %1180 = vset.pattern.permute.xlu1 %v1384_v30  ;;  %1179 = vset.pattern.permute.xlu2 %v1374_v20  ;;  %v1217_v30 = vld [vmem:[#allocation5 + $0x58] ss:$0 sm:$0xff] }
 0x1c2   : > { %606 = vperm.xlu0 %1192, %v1611_v7   ;;  %522 = vperm.xlu1 %1180, %v1611_v7  }
 0x1c3   : > { %515 = vperm.xlu2 %1179, %v1611_v7  }
 0x1ca   : > { %1197 = vset.pattern.permute.xlu0 %v1399_v46  ;;  %1183 = vset.pattern.permute.xlu1 %v1388_v34 }
 0x1cb   : > { %1181 = vset.pattern.permute.xlu2 %v1386_v32  ;;  %641 = vperm.xlu0 %1197, %v1611_v7  }
 0x1cc   : > { %543 = vperm.xlu1 %1183, %v1611_v7   ;;  %529 = vperm.xlu2 %1181, %v1611_v7  }
 0x1d3   : > { %746 = vrot.lane.b32.xlu0 %v1537_v3, %s1402_s17 }
 0x1d4   : > { %1185 = vset.pattern.permute.xlu1 %v1389_v35  ;;  %1184 = vset.pattern.permute.xlu2 %v1376_v22 }
 0x1d5   : > { %557 = vperm.xlu1 %1185, %v1611_v7   ;;  %550 = vperm.xlu2 %1184, %v1611_v7  }
 0x1d6   : > { %1203 = vset.pattern.permute.xlu0 %v1371_v1 }
 0x1dd   : > { %1188 = vset.pattern.permute.xlu1 %v1392_v38  ;;  %1186 = vset.pattern.permute.xlu2 %v1390_v36 }
 0x1de   : > { %578 = vperm.xlu1 %1188, %v1611_v7   ;;  %564 = vperm.xlu2 %1186, %v1611_v7  }
 0x1e6   : > { %1190 = vset.pattern.permute.xlu1 %v1393_v39  ;;  %1189 = vset.pattern.permute.xlu2 %v1379_v25  ;;  %v437_v25 = vld [vmem:[#allocation5 + $0x38] sm:$0xff] }
 0x1e7   : > { %592 = vperm.xlu1 %1190, %v1611_v7   ;;  %585 = vperm.xlu2 %1189, %v1611_v7   ;;  %v447_v27 = vperm.slane %v437_v25, 0  ;;  %v462_v34 = vperm.slane %v437_v25, 2  ;;  %v469_v39 = vperm.slane %v437_v25, 3  ;;  %v497_v9 = vperm.slane %v437_v25, 7 }
 0x1ef   : > { %1193 = vset.pattern.permute.xlu1 %v1396_v42  ;;  %1191 = vset.pattern.permute.xlu2 %v1394_v40  ;;  %v476_v40 = vperm.slane %v437_v25, 4 }
 0x1f0   : > { %613 = vperm.xlu1 %1193, %v1611_v7   ;;  %599 = vperm.xlu2 %1191, %v1611_v7  }
 0x1f7   : > { %v445_v20 = vpop.permute.xlu2 %444 }
 0x1f8   : > { %1195 = vset.pattern.permute.xlu1 %v1397_v43  ;;  %1194 = vset.pattern.permute.xlu2 %v1382_v28  ;;  %v455_v28 = vperm.slane %v437_v25, 1 }
 0x1f9   : > { %627 = vperm.xlu1 %1195, %v1611_v7   ;;  %620 = vperm.xlu2 %1194, %v1611_v7  }
 0x200   : > { %v460_v22 = vpop.permute.xlu2 %459 }
 0x201   : > { %1198 = vset.pattern.permute.xlu1 %v1400_v48  ;;  %1196 = vset.pattern.permute.xlu2 %v1398_v45  ;;  %v463_v38 = vmul.f32 %v462_v34, %v460_v22  ;;  %v483_v45 = vperm.slane %v437_v25, 5  ;;  %v490_v48 = vperm.slane %v437_v25, 6 }
 0x202   : > { %648 = vperm.xlu1 %1198, %v1611_v7   ;;  %634 = vperm.xlu2 %1196, %v1611_v7  }
 0x20a   : > { %1200 = vset.pattern.permute.xlu1 %v1401_v49  ;;  %1199 = vset.pattern.permute.xlu2 %v1385_v31  ;;  %v481_v26 = vpop.permute.xlu2 %480  ;;  %v448_v31 = vmul.f32 %v447_v27, %v445_v20 }
 0x20b   : > { %662 = vperm.xlu1 %1200, %v1611_v7   ;;  %655 = vperm.xlu2 %1199, %v1611_v7   ;;  %v484_v8 = vmul.f32 %v483_v45, %v481_v26  ;;  %v546_v7 = vperm.slane %v438_v5, 6  ;;  %v439_v26 = vld [vmem:[#allocation5 + $0x48] sm:$0xff] }
 0x20c   : > { %v450_v33 = vadd.f32 %v1217_v30, %v448_v31  ;;  %v560_v31 = vperm.slane %v439_v26, 0 }
 0x20e   : > { %v453_v24 = vpop.permute.xlu1 %452 }
 0x20f   : > { %v456_v32 = vmul.f32 %v455_v28, %v453_v24 }
 0x211   : > { %v457_v36 = vadd.f32 %v456_v32, %v450_v33 }
 0x213   : > { %741 = vrot.lane.b32.xlu2 %v1537_v3, %s1403_s27  ;;  %1201 = vset.pattern.permute.xlu1 %v1370_v0  ;;  %v495_v35 = vpop.permute.xlu2 %494  ;;  %v467_v3 = vpop.permute.xlu0 %466  ;;  %v464_v41 = vadd.f32 %v463_v38, %v457_v36  ;;  %s1315_s27 = scalar_lea.hbm %s1747_s2, 16 }
 0x214   : > { %1202 = vset.pattern.permute.xlu2 %v1372_v2  ;;  %v470_v42 = vmul.f32 %v469_v39, %v467_v3  ;;  %v498_v13 = vmul.f32 %v497_v9, %v495_v35  ;;  %v567_v35 = vperm.slane %v439_v26, 1  ;;  %p1317_p8 = scmp.lt.s32.totalorder %s1315_s27, %s1311_s5 }
 0x216   : > { %v471_v46 = vadd.f32 %v470_v42, %v464_v41  ;;  %v581_v41 = vperm.slane %v439_v26, 3  ;;  %p1318_p7 = por %p1317_p8, %p1316_p12 }
 0x218   : > { %v474_v29 = vpop.permute.xlu1 %473  ;;  %p1319_p9 = pnand %p1318_p7, %p1314_p5 }
 0x219   : > { %v477_v43 = vmul.f32 %v476_v40, %v474_v29  ;;  %v553_v29 = vperm.slane %v438_v5, 7  ;;  %v574_v40 = vperm.slane %v439_v26, 2  ;;  %v602_v5 = vperm.slane %v439_v26, 6 }
 0x21b   : > { %v478_v60 = vadd.f32 %v477_v43, %v471_v46  ;;  %v502_v50 = vpop.permute.xlu0 %501 }
 0x21c   : > { %v505_v16 = vmul.f32 %v504_v14, %v502_v50  ;;  %v440_v14 = vld [vmem:[#allocation5 + $0x50] sm:$0xff] }
 0x21d   : > { %v516_v49 = vpop.permute.xlu2 %515  ;;  %v485_v11 = vadd.f32 %v484_v8, %v478_v60  ;;  %v595_v60 = vperm.slane %v439_v26, 5 }
 0x21e   : > { %v519_v10 = vmul.f32 %v518_v18, %v516_v49 }
 0x221   : > { %v488_v37 = vpop.permute.xlu1 %487 }
 0x222   : > { %v491_v55 = vmul.f32 %v490_v48, %v488_v37  ;;  %v588_v48 = vperm.slane %v439_v26, 4 }
 0x223   : > { %v537_v20 = vpop.permute.xlu0 %536 }
 0x224   : > { %v492_v12 = vadd.f32 %v491_v55, %v485_v11  ;;  %v540_v24 = vmul.f32 %v539_v51, %v537_v20  ;;  %v644_v20 = vperm.slane %v440_v14, 4 }
 0x226   : > { %v530_v6 = vpop.permute.xlu2 %529  ;;  %v499_v15 = vadd.f32 %v498_v13, %v492_v12 }
 0x227   : > { %v533_v63 = vmul.f32 %v532_v54, %v530_v6  ;;  %v616_v6 = vperm.slane %v440_v14, 0 }
 0x228   : > { %v506_v19 = vadd.f32 %v505_v16, %v499_v15 }
 0x22b   : > { %v509_v61 = vpop.permute.xlu1 %508  ;;  %v572_v42 = vpop.permute.xlu0 %571 }
 0x22c   : > { %v512_v17 = vmul.f32 %v511_v56, %v509_v61  ;;  %v575_v45 = vmul.f32 %v574_v40, %v572_v42  ;;  %v609_v56 = vperm.slane %v439_v26, 7 }
 0x22e   : > { %v513_v53 = vadd.f32 %v512_v17, %v506_v19 }
 0x22f   : > { %v551_v47 = vpop.permute.xlu2 %550 }
 0x230   : > { %v520_v58 = vadd.f32 %v519_v10, %v513_v53  ;;  %v554_v33 = vmul.f32 %v553_v29, %v551_v47  ;;  %v623_v53 = vperm.slane %v440_v14, 1 }
 0x234   : > { %v523_v52 = vpop.permute.xlu1 %522 }
 0x235   : > { %v526_v57 = vmul.f32 %v525_v44, %v523_v52  ;;  %v607_v52 = vpop.permute.xlu0 %606  ;;  %v1404_v44 = vmov 0.0  }
 0x236   : > { %v610_v18 = vmul.f32 %v609_v56, %v607_v52  ;;  %899 = vst [vmem:[%s1681_s7] sm:$0xff] %v1404_v44 }
 0x237   : > { %v527_v62 = vadd.f32 %v526_v57, %v520_v58  ;;  %v630_v57 = vperm.slane %v440_v14, 2 }
 0x238   : > { %v565_v27 = vpop.permute.xlu2 %564 }
 0x239   : > { %v534_v22 = vadd.f32 %v533_v63, %v527_v62  ;;  %v568_v3 = vmul.f32 %v567_v35, %v565_v27  ;;  %v637_v62 = vperm.slane %v440_v14, 3 }
 0x23b   : > { %v541_v30 = vadd.f32 %v540_v24, %v534_v22  ;;  %v651_v24 = vperm.slane %v440_v14, 5 }
 0x23e   : > { %v544_v59 = vpop.permute.xlu1 %543 }
 0x23f   : > { %v547_v25 = vmul.f32 %v546_v7, %v544_v59 }
 0x241   : > { %v548_v32 = vadd.f32 %v547_v25, %v541_v30  ;;  %v586_v39 = vpop.permute.xlu2 %585  ;;  %v642_v25 = vpop.permute.xlu0 %641  ;;  %v658_v30 = vperm.slane %v440_v14, 6 }
 0x242   : > { %v589_v9 = vmul.f32 %v588_v48, %v586_v39  ;;  %v752_v48 = vld [vmem:[#allocation5 + $0x60] sm:$0x7] }
 0x243   : > { %v555_v36 = vadd.f32 %v554_v33, %v548_v32 }
 0x247   : > { %v558_v28 = vpop.permute.xlu1 %557 }
 0x248   : > { %v561_v34 = vmul.f32 %v560_v31, %v558_v28  ;;  %v645_v28 = vmul.f32 %v644_v20, %v642_v25 }
 0x249   : > { %v747_v40 = vpop.permute.xlu0 %746 }
 0x24a   : > { %v562_v37 = vadd.f32 %v561_v34, %v555_v36  ;;  %v600_v55 = vpop.permute.xlu2 %599  ;;  %v665_v34 = vperm.slane %v440_v14, 7 }
 0x24b   : > { %v603_v50 = vmul.f32 %v602_v5, %v600_v55 }
 0x24c   : > { %v569_v43 = vadd.f32 %v568_v3, %v562_v37 }
 0x24e   : > { %v576_v49 = vadd.f32 %v575_v45, %v569_v43 }
 0x250   : > { %v579_v38 = vpop.permute.xlu1 %578 }
 0x251   : > { %v582_v46 = vmul.f32 %v581_v41, %v579_v38 }
 0x253   : > { %v583_v8 = vadd.f32 %v582_v46, %v576_v49  ;;  %v621_v17 = vpop.permute.xlu2 %620  ;;  %v759_v49 = vperm.slane %v752_v48, 0 }
 0x254   : > { %v624_v58 = vmul.f32 %v623_v53, %v621_v17  ;;  %v778_v17 = vld [vmem:[#allocation5 + $0x70] sm:$0x3f] }
 0x255   : > { %v590_v12 = vadd.f32 %v589_v9, %v583_v8  ;;  %v774_v9 = vperm.slane %v752_v48, 2 }
 0x259   : > { %v593_v61 = vpop.permute.xlu1 %592 }
 0x25a   : > { %v596_v11 = vmul.f32 %v595_v60, %v593_v61  ;;  %v767_v60 = vperm.slane %v752_v48, 1  ;;  %v1218_v61 = vld [vmem:[#allocation5 + $0x68] ss:$0 sm:$0xff] }
 0x25c   : > { %v597_v13 = vadd.f32 %v596_v11, %v590_v12  ;;  %v635_v63 = vpop.permute.xlu2 %634 }
 0x25d   : > { %v638_v22 = vmul.f32 %v637_v62, %v635_v63  ;;  %v807_v62 = vperm.slane %v778_v17, 3 }
 0x25e   : > { %v604_v16 = vadd.f32 %v603_v50, %v597_v13 }
 0x260   : > { %v611_v10 = vadd.f32 %v610_v18, %v604_v16 }
 0x262   : > { %v614_v15 = vpop.permute.xlu1 %613 }
 0x263   : > { %v617_v19 = vmul.f32 %v616_v6, %v614_v15 }
 0x265   : > { %v618_v47 = vadd.f32 %v617_v19, %v611_v10  ;;  %v656_v32 = vpop.permute.xlu2 %655  ;;  %v1219_v10 = vld [vmem:[#allocation5 + $0x78] ss:$0 sm:$0xff] }
 0x266   : > { %v659_v35 = vmul.f32 %v658_v30, %v656_v32 }
 0x267   : > { %v625_v51 = vadd.f32 %v624_v58, %v618_v47 }
 0x26b   : > { %v628_v54 = vpop.permute.xlu1 %627 }
 0x26c   : > { %v631_v59 = vmul.f32 %v630_v57, %v628_v54  ;;  %v1405_v54 = vmov 1.00002  }
 0x26d   : > { %v742_v3 = vpop.permute.xlu2 %741 }
 0x26e   : > { %v632_v7 = vadd.f32 %v631_v59, %v625_v51 }
 0x270   : > { %v639_v26 = vadd.f32 %v638_v22, %v632_v7 }
 0x272   : > { %v646_v31 = vadd.f32 %v645_v28, %v639_v26 }
 0x274   : > { %v649_v27 = vpop.permute.xlu1 %648 }
 0x275   : > { %v652_v29 = vmul.f32 %v651_v24, %v649_v27  ;;  %v814_v27 = vperm.slane %v778_v17, 4 }
 0x277   : > { %v653_v33 = vadd.f32 %v652_v29, %v646_v31 }
 0x279   : > { %v660_v37 = vadd.f32 %v659_v35, %v653_v33  ;;  %v821_v33 = vperm.slane %v778_v17, 5 }
 0x27d   : > { %v663_v36 = vpop.permute.xlu1 %662 }
 0x27e   : > { %v666_v38 = vmul.f32 %v665_v34, %v663_v36 }
 0x280   : > { %v1684_v39 = vadd.f32 %v666_v38, %v660_v37 }
 0x282   : > { %v745_v41 = vmul.f32 -0.5, %v1684_v39  ;;  %v740_v42 = vmul.f32 0.5, %v1684_v39  ;;  %v1025_v15 = vmul.f32 -1.442695, %v1684_v39 }
 0x284   : > { %v749_v43 = vadd.f32 %v747_v40, %v745_v41  ;;  %v744_v45 = vadd.f32 %v742_v3, %v740_v42  ;;  %1221 = vpow2.f32 %v1025_v15 }
 0x286   : > { %vm750_vm0 = vcmp.gt.f32.partialorder %v749_v43, %v744_v45 }
 0x287   : > { %v1688_v46 = vsel %vm750_vm0, 1.0, %v1404_v44  ;;  %vm917_vm0 = vcmask 89152  }
 0x288   : > { %771 = vperm.xlu0 %1203, %v1688_v46   ;;  %764 = vperm.xlu2 %1202, %v1688_v46  }
 0x289   : > { %756 = vperm.xlu1 %1201, %v1688_v46  }
 0x28a   : > { %v1222_v52 = vpop.eup %1221 }
 0x28b   : > { %v671_v16 = vadd.f32 1.0, %v1222_v52 }
 0x28d   : > { %1223 = vrcp.f32 %v671_v16  ;;  %v683_v30 = vand.u32 2147483648, %v671_v16  ;;  %vm677_vm2 = vweird.f32 %v671_v16  ;;  %v681_v34 = vand.u32 2147483647, %v671_v16 }
 0x28e   : > { %1225 = vrcp.f32 %v1405_v54 }
 0x28f   : > { %v684_v38 = vor.u32 1.1754944e-38, %v683_v30  ;;  %vm682_vm4 = vcmp.eq.f32.partialorder %v681_v34, 8.507059e+37 }
 0x290   : > { %1206 = vset.pattern.permute.xlu0 %v1377_v23 }
 0x293   : > { %v1224_v18 = vpop.eup %1223 }
 0x294   : > { %v673_v53 = vmul.f32 %v1224_v18, %v671_v16  ;;  %v1226_v24 = vpop.eup %1225  ;;  %vm678_vm1 = vweird.f32 %v1224_v18 }
 0x295   : > { %v690_v31 = vmul.f32 1.00002, %v1226_v24  ;;  %vm679_vm3 = vmor %vm677_vm2, %vm678_vm1  ;;  %vm694_vm5 = vweird.f32 %v1226_v24 }
 0x296   : > { %v674_v47 = vsub.f32 1.0, %v673_v53 }
 0x297   : > { %v691_v40 = vsub.f32 1.0, %v690_v31 }
 0x298   : > { %v675_v63 = vmul.f32 %v1224_v18, %v674_v47 }
 0x299   : > { %v692_v45 = vmul.f32 %v1226_v24, %v691_v40 }
 0x29a   : > { %v676_v28 = vadd.f32 %v1224_v18, %v675_v63 }
 0x29c   : > { %v680_v36 = vsel %vm679_vm3, %v1224_v18, %v676_v28 }
 0x29d   : > { %v685_v42 = vsel %vm682_vm4, %v684_v38, %v680_v36 }
 0x2e2   : > { %v765_v8 = vpop.permute.xlu2 %764 }
 0x2e3   : > { %v768_v12 = vmul.f32 %v767_v60, %v765_v8  ;;  %v693_v60 = vadd.f32 %v1226_v24, %v692_v45 }
 0x2e5   : > { %v695_v8 = vsel %vm694_vm5, %v1226_v24, %v693_v60 }
 0x2fa   : > { %v772_v5 = vpop.permute.xlu0 %771 }
 0x2fb   : > { %v757_v55 = vpop.permute.xlu1 %756  ;;  %v775_v14 = vmul.f32 %v774_v9, %v772_v5  ;;  %v697_v9 = vadd.f32 1e-05, %v685_v42 }
 0x2fc   : > { %v760_v11 = vmul.f32 %v759_v49, %v757_v55  ;;  %v687_v49 = vsub.f32 1.0, %v685_v42 }
 0x2fe   : > { %v762_v13 = vadd.f32 %v1218_v61, %v760_v11  ;;  %v688_v61 = vadd.f32 1e-05, %v687_v49  ;;  %v698_v11 = vmul.f32 %v697_v9, %v695_v8 }
 0x300   : > { %v769_v56 = vadd.f32 %v768_v12, %v762_v13  ;;  %v696_v55 = vmul.f32 %v695_v8, %v688_v61 }
 0x302   : > { %v776_v50 = vadd.f32 %v775_v14, %v769_v56 }
 0x304   : > { %v777_v6 = vmax.f32 %v776_v50, 0.0 }
 0x306   : > { %811 = vperm.xlu0 %1206, %v777_v6   ;;  %790 = vperm.xlu2 %1202, %v777_v6  }
 0x307   : > { %782 = vperm.xlu1 %1201, %v777_v6  }
 0x30e   : > { %1205 = vset.pattern.permute.xlu2 %v1375_v21  ;;  %1211 = vset.pattern.permute.xlu0 %v1375_v21  ;;  %v785_v21 = vperm.slane %v778_v17, 0 }
 0x30f   : > { %1204 = vset.pattern.permute.xlu1 %v1371_v1  ;;  %804 = vperm.xlu2 %1205, %v777_v6  }
 0x310   : > { %797 = vperm.xlu1 %1204, %v777_v6  }
 0x317   : > { %1208 = vset.pattern.permute.xlu2 %v1370_v0  ;;  %v793_v0 = vperm.slane %v778_v17, 1 }
 0x318   : > { %1207 = vset.pattern.permute.xlu1 %v1373_v4 }
 0x319   : > { %818 = vperm.xlu1 %1207, %v777_v6  }
 0x321   : > { %1209 = vset.pattern.permute.xlu1 %v1372_v2  ;;  %v800_v2 = vperm.slane %v778_v17, 2 }
 0x360   : > { %v791_v19 = vpop.permute.xlu2 %790 }
 0x361   : > { %v794_v59 = vmul.f32 %v793_v0, %v791_v19 }
 0x369   : > { %v805_v7 = vpop.permute.xlu2 %804 }
 0x36a   : > { %v808_v26 = vmul.f32 %v807_v62, %v805_v7  ;;  %v1409_v62 = vmov 1.003  }
 0x36b   : > { %1227 = vrcp.f32 %v1409_v62 }
 0x371   : > { %v1228_v24 = vpop.eup %1227 }
 0x372   : > { %vm896_vm8 = vweird.f32 %v1228_v24 }
 0x378   : > { %v812_v29 = vpop.permute.xlu0 %811 }
 0x379   : > { %v783_v44 = vpop.permute.xlu1 %782  ;;  %v815_v35 = vmul.f32 %v814_v27, %v812_v29 }
 0x37a   : > { %v786_v57 = vmul.f32 %v785_v21, %v783_v44 }
 0x37c   : > { %v788_v58 = vadd.f32 %v1219_v10, %v786_v57 }
 0x37e   : > { %v795_v20 = vadd.f32 %v794_v59, %v788_v58 }
 0x382   : > { %v798_v51 = vpop.permute.xlu1 %797 }
 0x383   : > { %v801_v22 = vmul.f32 %v800_v2, %v798_v51 }
 0x385   : > { %v802_v25 = vadd.f32 %v801_v22, %v795_v20 }
 0x387   : > { %v809_v32 = vadd.f32 %v808_v26, %v802_v25 }
 0x389   : > { %v816_v3 = vadd.f32 %v815_v35, %v809_v32 }
 0x38b   : > { %v819_v37 = vpop.permute.xlu1 %818 }
 0x38c   : > { %v822_v41 = vmul.f32 %v821_v33, %v819_v37  ;;  %v892_v33 = vmul.f32 1.003, %v1228_v24 }
 0x38e   : > { %v823_v43 = vadd.f32 %v822_v41, %v816_v3  ;;  %v893_v37 = vsub.f32 1.0, %v892_v33 }
 0x390   : > { %v824_v48 = vmax.f32 %v823_v43, 0.0  ;;  %v894_v3 = vmul.f32 %v1228_v24, %v893_v37 }
 0x392   : > { %851 = vperm.xlu0 %1211, %v824_v48   ;;  %837 = vperm.xlu1 %1209, %v824_v48  }
 0x393   : > { %829 = vperm.xlu2 %1208, %v824_v48  }
 0x39a   : > { %704 = vrot.lane.b32.xlu0 %v696_v55, %s1406_s8  ;;  %1212 = vset.pattern.permute.xlu1 %v1377_v23  ;;  %v825_v23 = vld [vmem:[#allocation5 + $0x80] sm:$0x3f] }
 0x39b   : > { %1210 = vset.pattern.permute.xlu2 %v1371_v1  ;;  %858 = vperm.xlu1 %1212, %v824_v48   ;;  %v832_v12 = vperm.slane %v825_v23, 0  ;;  %v1220_v1 = vld [vmem:[#allocation5 + $0x88] ss:$0 sm:$0xff]  ;;  %v840_v14 = vperm.slane %v825_v23, 1  ;;  %v847_v50 = vperm.slane %v825_v23, 2  ;;  %v854_v17 = vperm.slane %v825_v23, 3 }
 0x39c   : > { %844 = vperm.xlu2 %1210, %v824_v48   ;;  %1214 = vset.pattern.permute.xlu0 %v1373_v4  ;;  %v861_v19 = vperm.slane %v825_v23, 4  ;;  %v868_v44 = vperm.slane %v825_v23, 5 }
 0x3a3   : > { %700 = vrot.lane.b32.xlu1 %v696_v55, %s1407_s13 }
 0x3a4   : > { %1213 = vset.pattern.permute.xlu2 %v1373_v4 }
 0x3a5   : > { %865 = vperm.xlu2 %1213, %v824_v48   ;;  %v895_v48 = vadd.f32 %v1228_v24, %v894_v3 }
 0x3ab   : > { %716 = vrot.lane.b32.xlu1 %v698_v11, %s1406_s8 }
 0x3ad   : > { %709 = vrot.lane.b32.xlu2 %v698_v11, %s1407_s13 }
 0x3b3   : > { %909 = vrot.lane.b32.xlu1 %v1684_v39, %s1408_s14 }
 0x3ed   : > { %v830_v5 = vpop.permute.xlu2 %829 }
 0x3ee   : > { %v833_v13 = vmul.f32 %v832_v12, %v830_v5  ;;  %v1413_v5 = vmov 1.002  }
 0x3f0   : > { %v835_v15 = vadd.f32 %v1220_v1, %v833_v13 }
 0x3f6   : > { %v845_v56 = vpop.permute.xlu2 %844 }
 0x3f7   : > { %v848_v16 = vmul.f32 %v847_v50, %v845_v56 }
 0x3ff   : > { %v866_v39 = vpop.permute.xlu2 %865 }
 0x400   : > { %v869_v47 = vmul.f32 %v868_v44, %v866_v39 }
 0x404   : > { %v838_v6 = vpop.permute.xlu1 %837  ;;  %v852_v18 = vpop.permute.xlu0 %851 }
 0x405   : > { %v841_v52 = vmul.f32 %v840_v14, %v838_v6  ;;  %v855_v53 = vmul.f32 %v854_v17, %v852_v18 }
 0x407   : > { %v842_v4 = vadd.f32 %v841_v52, %v835_v15  ;;  %v710_v63 = vpop.permute.xlu2 %709 }
 0x408   : > { %v712_v20 = vmul.f32 %v710_v63, %v696_v55  ;;  %v721_v30 = vmul.f32 %v710_v63, %v698_v11 }
 0x409   : > { %v849_v21 = vadd.f32 %v848_v16, %v842_v4 }
 0x40b   : > { %v856_v57 = vadd.f32 %v855_v53, %v849_v21 }
 0x40c   : > { %v705_v7 = vpop.permute.xlu0 %704 }
 0x40d   : > { %v859_v10 = vpop.permute.xlu1 %858  ;;  %v713_v26 = vmul.f32 %v712_v20, %v705_v7 }
 0x40e   : > { %v862_v0 = vmul.f32 %v861_v19, %v859_v10 }
 0x410   : > { %v863_v54 = vadd.f32 %v862_v0, %v856_v57 }
 0x412   : > { %v870_v58 = vadd.f32 %v869_v47, %v863_v54 }
 0x414   : > { %v1026_v2 = vmul.f32 -1.442695, %v870_v58 }
 0x415   : > { %v701_v59 = vpop.permute.xlu1 %700 }
 0x416   : > { %1229 = vpow2.f32 %v1026_v2  ;;  %v703_v51 = vmul.f32 %v701_v59, %v698_v11  ;;  %v715_v27 = vmul.f32 %v701_v59, %v696_v55  ;;  %v897_v55 = vsel %vm896_vm8, %v1228_v24, %v895_v48 }
 0x418   : > { %v707_v22 = vmul.f32 %v705_v7, %v703_v51 }
 0x41a   : > { %v714_v31 = vadd.f32 %v713_v26, %v707_v22 }
 0x41c   : > { %v1230_v25 = vpop.eup %1229 }
 0x41d   : > { %v874_v28 = vadd.f32 1.0, %v1230_v25  ;;  %v717_v29 = vpop.permute.xlu1 %716 }
 0x41e   : > { %v719_v32 = vmul.f32 %v717_v29, %v715_v27  ;;  %v722_v35 = vmul.f32 %v721_v30, %v717_v29 }
 0x41f   : > { %1231 = vrcp.f32 %v874_v28  ;;  %v886_v42 = vand.u32 2147483648, %v874_v28  ;;  %v884_v45 = vand.u32 2147483647, %v874_v28  ;;  %vm880_vm7 = vweird.f32 %v874_v28 }
 0x420   : > { %v720_v34 = vadd.f32 %v719_v32, %v714_v31  ;;  %1233 = vrcp.f32 %v1413_v5 }
 0x421   : > { %v887_v60 = vor.u32 1.1754944e-38, %v886_v42  ;;  %vm885_vm10 = vcmp.eq.f32.partialorder %v884_v45, 8.507059e+37 }
 0x422   : > { %v723_v36 = vadd.f32 %v722_v35, %v720_v34 }
 0x424   : > { %726 = vrot.lane.b32.xlu2 %v723_v36, %s1410_s15  ;;  %v724_v14 = vsub.f32 1.0, %v723_v36 }
 0x425   : > { %v1232_v38 = vpop.eup %1231  ;;  %v910_v16 = vpop.permute.xlu1 %909 }
 0x426   : > { %v876_v40 = vmul.f32 %v1232_v38, %v874_v28  ;;  %vm881_vm6 = vweird.f32 %v1232_v38  ;;  %v1234_v23 = vpop.eup %1233 }
 0x427   : > { %vm882_vm9 = vmor %vm880_vm7, %vm881_vm6  ;;  %v733_v12 = vmul.f32 1.002, %v1234_v23  ;;  %vm737_vm12 = vweird.f32 %v1234_v23 }
 0x428   : > { %v877_v41 = vsub.f32 1.0, %v876_v40 }
 0x42a   : > { %v878_v43 = vmul.f32 %v1232_v38, %v877_v41 }
 0x42c   : > { %914 = vrot.lane.b32.xlu2 %v1688_v46, %s1411_s18  ;;  %v879_v49 = vadd.f32 %v1232_v38, %v878_v43  ;;  %v734_v46 = vsub.f32 1.0, %v733_v12 }
 0x42e   : > { %v883_v61 = vsel %vm882_vm9, %v1232_v38, %v879_v49  ;;  %v735_v1 = vmul.f32 %v1234_v23, %v734_v46 }
 0x42f   : > { %v888_v8 = vsel %vm885_vm10, %v887_v60, %v883_v61 }
 0x430   : > { %v890_v9 = vadd.f32 0.001, %v888_v8  ;;  %v736_v13 = vadd.f32 %v1234_v23, %v735_v1 }
 0x432   : > { %v898_v11 = vmul.f32 %v897_v55, %v890_v9  ;;  %v738_v50 = vsel %vm737_vm12, %v1234_v23, %v736_v13 }
 0x434   : > { %903 = vrot.lane.b32.xlu0 %v898_v11, %s1412_s19 }
 0x47e   : > { %v727_v56 = vpop.permute.xlu2 %726 }
 0x47f   : > { %v730_v6 = vsel %vm729_vm11, %v724_v14, %v727_v56 }
 0x480   : > { %v731_v15 = vadd.f32 0.001, %v730_v6 }
 0x482   : > { %v739_v52 = vmul.f32 %v738_v50, %v731_v15 }
 0x484   : > { %901 = vst.msk [vmem:[%s1681_s7] sm:$0xff] %vm900_vm13, %v739_v52 }
 0x486   : > { %v915_v17 = vpop.permute.xlu2 %914 }
 0x4a6   : > { %v904_v4 = vpop.permute.xlu0 %903 }
 0x4a7   : > { %907 = vst.msk [vmem:[%s1681_s7] sm:$0xff] %vm906_vm14, %v904_v4 }
 0x4a8   : > { %913 = vst.msk [vmem:[%s1681_s7] sm:$0xff] %vm912_vm15, %v910_v16 }
 0x4a9   : > { %918 = vst.msk [vmem:[%s1681_s7] sm:$0xff] %vm917_vm0, %v915_v17 }
 0x4aa   : > { %1322 = shalt.err (!%p1319_p9)
}
 0x4ab   : > { %1037 = dma.vmem_to_hbm [thread:$0]  (%p1489_p13), %s933_s25, 128, %s935_s3, %s920_s4  }
 0x4ac PF: > { %s946_s29 = sand.u32 1, %s1353_s9   ;;  %p1753_p10 = scmp.ge.s32.totalorder %s1365_s12, 2 }
 0x4ad   : > { %s947_s7 = scalar_lea.sflag [#allocation4], %s946_s29 }
 0x4ae   : > { %p1048_p11 = pnand %p1753_p10, %p1494_p4 }
 0x4b0   : > { %p1049_p0 = pneg %p1048_p11 }
 0x4b2   : > { %1348 = dma.done.wait (%p1049_p0), %s947_s7, 128  }
 0x4b3   : > { %1350 = vsyncadd (%p1049_p0), %s947_s7, 4294967168  ;;  %p16_p2 = scmp.ge.s32.totalorder %s1469_s23, 4   ;;  %s1754_s9 = smov %s1357_s10 }
 0x4b4   : > { %s1755_s10 = smov %s1361_s11  ;;  %s1756_s11 = smov %s1481_s26 }
 0x4b5   : > { %s1757_s12 = smov %s1469_s23  ;;  %18 = sbr.rel (!%p16_p2) target bundleno = 6 (0x6), region = 77 }
 0x4ba   :  { %953 = vsyncpa [#allocation3], 1 }
 0x4bb   :  { %955 = vsyncpa [#allocation3 + $0x1], 1 }
 0x4bc   :  { %956 = vsyncpa [#allocation6], 1 }
 0x4bd   :  { %957 = vsyncpa [#allocation4], 1 }
 0x4be   :  { %959 = vsyncpa [#allocation4 + $0x1], 1 }

</bundles_post_ra>
